<compile_context>
chip_gen: v6e
topology: v6e:2x2x1
jax: 0.10.0
libtpu: 0.0.40
codegen_flags: <defaults>
</compile_context>

<pallas_src>
import functools

import jax
import jax.numpy as jnp
from jax.experimental import pallas as pl
from jax.experimental.pallas import tpu as pltpu

HIDDEN = 500        # as in the PyTorch module
HIDDEN_PAD = 512    # lane-aligned hidden width used inside the kernel
LANE = 128
SUBLANE = 16        # bf16 sublane packing; also a safe f32 row granule


def _round_up(n, m):
    return ((n + m - 1) // m) * m


def _mlp_kernel(x_ref,
                w1_ref, b1_ref,
                w2_ref, b2_ref,
                w3_ref, b3_ref,
                w4_ref, b4_ref,
                o_ref):
    # f32 -> bf16 cast done in-kernel (free under the MXU slot).
    x = x_ref[...].astype(jnp.bfloat16)
    # Layer 1: Linear(input_dim, 512) + ReLU   (bf16 matmul, f32 accumulate)
    h = jnp.dot(x, w1_ref[...], preferred_element_type=jnp.float32)
    h = jnp.maximum(h + b1_ref[...], 0.0).astype(jnp.bfloat16)
    # Layer 2: Linear(512, 512) + ReLU
    h = jnp.dot(h, w2_ref[...], preferred_element_type=jnp.float32)
    h = jnp.maximum(h + b2_ref[...], 0.0).astype(jnp.bfloat16)
    # Layer 3: Linear(512, 512) + ReLU
    h = jnp.dot(h, w3_ref[...], preferred_element_type=jnp.float32)
    h = jnp.maximum(h + b3_ref[...], 0.0).astype(jnp.bfloat16)
    # Output layer: Linear(512, class_pad) — logits, no activation, f32 out
    o_ref[...] = (jnp.dot(h, w4_ref[...], preferred_element_type=jnp.float32)
                  + b4_ref[...]).astype(o_ref.dtype)


@functools.partial(jax.jit, static_argnames=("class_size", "block_b"))
def mlp_forward(x, kernel_params, *, class_size, block_b=512):
    """x: (B, input_dim) f32 -> (B, class_size) f32 logits.

    kernel_params: padded/transposed params from `prepare_params`
      (weights (in, out_pad) bf16, biases (1, out_pad) f32).
    """
    w1, b1, w2, b2, w3, b3, w4, b4 = kernel_params
    B, d_in = x.shape
    out_pad = w4.shape[1]

    # --- batch tiling: balanced tiles, >=2 grid steps when the batch allows
    #     (so v7x shards the "parallel" axis over both TensorCores), padding
    #     waste capped at one sublane group.
    n_steps = max(int(pl.cdiv(B, block_b)), 1)
    if n_steps < 2 and B > SUBLANE:
        n_steps = 2
    bb = max(SUBLANE, _round_up(int(pl.cdiv(B, n_steps)), SUBLANE))
    B_pad = bb * n_steps

    # Only pad batch rows (features stay unpadded; cast happens in-kernel).
    x_pad = x if B_pad == B else jnp.pad(x, ((0, B_pad - B), (0, 0)))

    # Grid-invariant weights/biases: whole-array, single-buffered, VMEM-resident.
    vmem_whole = pl.BlockSpec(memory_space=pltpu.MemorySpace.VMEM)

    # Explicit scoped-VMEM budget: weights + double-buffered x/out tiles +
    # in-kernel f32 accumulators / bf16 copies, with headroom.
    weight_bytes = sum(int(p.size) * p.dtype.itemsize for p in kernel_params)
    need = (weight_bytes
            + 2 * bb * d_in * 4            # x tile, double-buffered (f32)
            + 2 * bb * out_pad * 4         # out tile, double-buffered (f32)
            + 4 * bb * HIDDEN_PAD * 4)     # inter-layer scratch (generous)
    vmem_limit = min(max(int(1.5 * need), 16 << 20), 64 << 20)

    out = pl.pallas_call(
        _mlp_kernel,
        out_shape=jax.ShapeDtypeStruct((B_pad, out_pad), jnp.float32),
        grid_spec=pltpu.PrefetchScalarGridSpec(
            num_scalar_prefetch=0,
            grid=(n_steps,),
            in_specs=[
                pl.BlockSpec((bb, d_in), lambda i: (i, 0)),   # streamed x tile
                vmem_whole, vmem_whole,                        # w1, b1
                vmem_whole, vmem_whole,                        # w2, b2
                vmem_whole, vmem_whole,                        # w3, b3
                vmem_whole, vmem_whole,                        # w4, b4
            ],
            out_specs=pl.BlockSpec((bb, out_pad), lambda i: (i, 0)),
        ),
        compiler_params=pltpu.CompilerParams(
            dimension_semantics=("parallel",),
            vmem_limit_bytes=vmem_limit),
    )(x_pad, w1, b1, w2, b2, w3, b3, w4, b4)

    return out[:B, :class_size]


def init_params(key, input_dim, class_size):
    """PyTorch-style params: list of (W (out,in) f32, b (out,) f32),
    init mimicking nn.Linear's default U(-1/sqrt(fan_in), +1/sqrt(fan_in))."""
    dims = [(input_dim, HIDDEN), (HIDDEN, HIDDEN), (HIDDEN, HIDDEN),
            (HIDDEN, class_size)]
    params = []
    for fan_in, fan_out in dims:
        key, kw, kb = jax.random.split(key, 3)
        bound = float(fan_in) ** -0.5
        W = jax.random.uniform(kw, (fan_out, fan_in), jnp.float32,
                               minval=-bound, maxval=bound)
        b = jax.random.uniform(kb, (fan_out,), jnp.float32,
                               minval=-bound, maxval=bound)
        params.append((W, b))
    return params


def prepare_params(torch_style_params, input_dim, class_size):
    """Transpose to (in, out), zero-pad hidden -> 512 and classes -> lane
    multiple, cast weights to bf16 (biases stay f32, added to the f32
    accumulator in-kernel).  Layer-1 keeps its true input_dim as K."""
    out_pad = max(LANE, _round_up(class_size, LANE))
    padded_dims = [(input_dim, HIDDEN_PAD), (HIDDEN_PAD, HIDDEN_PAD),
                   (HIDDEN_PAD, HIDDEN_PAD), (HIDDEN_PAD, out_pad)]
    kernel_params = []
    for (W, b), (pi, po) in zip(torch_style_params, padded_dims):
        fan_out, fan_in = W.shape
        wt = jnp.zeros((pi, po), jnp.float32).at[:fan_in, :fan_out].set(W.T)
        bp = jnp.zeros((1, po), jnp.float32).at[0, :fan_out].set(b)
        kernel_params += [wt.astype(jnp.bfloat16), bp]
    return tuple(kernel_params)


def mlp_reference(x, torch_style_params):
    """Pure f32 reference with exact PyTorch semantics."""
    h = x
    n = len(torch_style_params)
    for i, (W, b) in enumerate(torch_style_params):
        h = h @ W.T + b
        if i < n - 1:
            h = jnp.maximum(h, 0.0)
    return h


if __name__ == "__main__":
    key = jax.random.PRNGKey(0)
    k_x, k_x2, k_p = jax.random.split(key, 3)

    input_dim, class_size = 32, 10
    torch_params = init_params(k_p, input_dim, class_size)
    kernel_params = prepare_params(torch_params, input_dim, class_size)

    # Small batch (single grid step).
    batch = 8
    x = jax.random.normal(k_x, (batch, input_dim), jnp.float32)
    logits = mlp_forward(x, kernel_params, class_size=class_size)
    logits = jax.block_until_ready(logits)
    ref = mlp_reference(x, torch_params)
    assert logits.shape == (batch, class_size)
    max_err = float(jnp.max(jnp.abs(logits - ref)))
    # bf16 weights/activations with f32 accumulation -> relaxed tolerance.
    assert max_err < 3e-2, f"max abs err {max_err}"

    # Awkward batch (exercises batch-row padding + multi-step parallel grid).
    batch2 = 40
    x2 = jax.random.normal(k_x2, (batch2, input_dim), jnp.float32)
    logits2 = jax.block_until_ready(
        mlp_forward(x2, kernel_params, class_size=class_size))
    ref2 = mlp_reference(x2, torch_params)
    assert logits2.shape == (batch2, class_size)
    max_err2 = float(jnp.max(jnp.abs(logits2 - ref2)))
    assert max_err2 < 3e-2, f"max abs err {max_err2}"

    print("KERNEL_OK")
</pallas_src>

<mosaic_0001>
module attributes {stable_mosaic.version = 11 : i64} {
  func.func @_mlp_kernel(%arg0: i32, %arg1: memref<16x32xf32, #tpu.memory_space<vmem>>, %arg2: memref<32x512xbf16, #tpu.memory_space<vmem>>, %arg3: memref<1x512xf32, #tpu.memory_space<vmem>>, %arg4: memref<512x512xbf16, #tpu.memory_space<vmem>>, %arg5: memref<1x512xf32, #tpu.memory_space<vmem>>, %arg6: memref<512x512xbf16, #tpu.memory_space<vmem>>, %arg7: memref<1x512xf32, #tpu.memory_space<vmem>>, %arg8: memref<512x128xbf16, #tpu.memory_space<vmem>>, %arg9: memref<1x128xf32, #tpu.memory_space<vmem>>, %arg10: memref<16x128xf32, #tpu.memory_space<vmem>>) attributes {dimension_semantics = [#tpu.dimension_semantics<parallel>], iteration_bounds = array<i64: 1>, scalar_prefetch = 0 : i64, scratch_operands = 0 : i64, tpu.core_type = #tpu.core_type<tc>, window_params = [{transform_indices = @transform_0, window_bounds = array<i64: 16, 32>}, {pipeline_mode = #tpu.pipeline_mode<synchronous>, transform_indices = @transform_1, window_bounds = array<i64: 32, 512>}, {pipeline_mode = #tpu.pipeline_mode<synchronous>, transform_indices = @transform_2, window_bounds = array<i64: 1, 512>}, {pipeline_mode = #tpu.pipeline_mode<synchronous>, transform_indices = @transform_3, window_bounds = array<i64: 512, 512>}, {pipeline_mode = #tpu.pipeline_mode<synchronous>, transform_indices = @transform_4, window_bounds = array<i64: 1, 512>}, {pipeline_mode = #tpu.pipeline_mode<synchronous>, transform_indices = @transform_5, window_bounds = array<i64: 512, 512>}, {pipeline_mode = #tpu.pipeline_mode<synchronous>, transform_indices = @transform_6, window_bounds = array<i64: 1, 512>}, {pipeline_mode = #tpu.pipeline_mode<synchronous>, transform_indices = @transform_7, window_bounds = array<i64: 512, 128>}, {pipeline_mode = #tpu.pipeline_mode<synchronous>, transform_indices = @transform_8, window_bounds = array<i64: 1, 128>}, {transform_indices = @transform_9, window_bounds = array<i64: 16, 128>}]} {
    %c0 = arith.constant 0 : index
    %c0_0 = arith.constant 0 : index
    %0 = vector.load %arg1[%c0, %c0_0] : memref<16x32xf32, #tpu.memory_space<vmem>>, vector<16x32xf32>
    %1 = arith.truncf %0 : vector<16x32xf32> to vector<16x32xbf16>
    %c0_1 = arith.constant 0 : index
    %c0_2 = arith.constant 0 : index
    %2 = vector.load %arg2[%c0_1, %c0_2] : memref<32x512xbf16, #tpu.memory_space<vmem>>, vector<32x512xbf16>
    %cst = arith.constant dense<0.000000e+00> : vector<16x512xf32>
    %3 = tpu.matmul %1, %2, %cst {dimension_numbers = #tpu.dot_dimension_numbers<[1], [0], [0], [1], [0, 0, 1, 1], [], []>} : vector<16x32xbf16>, vector<32x512xbf16>, vector<16x512xf32> -> vector<16x512xf32>
    %c0_3 = arith.constant 0 : index
    %c0_4 = arith.constant 0 : index
    %4 = vector.load %arg3[%c0_3, %c0_4] : memref<1x512xf32, #tpu.memory_space<vmem>>, vector<1x512xf32>
    %5 = vector.broadcast %4 : vector<1x512xf32> to vector<16x512xf32>
    %6 = arith.addf %3, %5 : vector<16x512xf32>
    %cst_5 = arith.constant 0.000000e+00 : f32
    %7 = vector.broadcast %cst_5 : f32 to vector<16x512xf32>
    %8 = arith.maximumf %6, %7 : vector<16x512xf32>
    %9 = arith.truncf %8 : vector<16x512xf32> to vector<16x512xbf16>
    %c0_6 = arith.constant 0 : index
    %c0_7 = arith.constant 0 : index
    %10 = vector.load %arg4[%c0_6, %c0_7] : memref<512x512xbf16, #tpu.memory_space<vmem>>, vector<512x512xbf16>
    %cst_8 = arith.constant dense<0.000000e+00> : vector<16x512xf32>
    %11 = tpu.matmul %9, %10, %cst_8 {dimension_numbers = #tpu.dot_dimension_numbers<[1], [0], [0], [1], [0, 0, 1, 1], [], []>} : vector<16x512xbf16>, vector<512x512xbf16>, vector<16x512xf32> -> vector<16x512xf32>
    %c0_9 = arith.constant 0 : index
    %c0_10 = arith.constant 0 : index
    %12 = vector.load %arg5[%c0_9, %c0_10] : memref<1x512xf32, #tpu.memory_space<vmem>>, vector<1x512xf32>
    %13 = vector.broadcast %12 : vector<1x512xf32> to vector<16x512xf32>
    %14 = arith.addf %11, %13 : vector<16x512xf32>
    %cst_11 = arith.constant 0.000000e+00 : f32
    %15 = vector.broadcast %cst_11 : f32 to vector<16x512xf32>
    %16 = arith.maximumf %14, %15 : vector<16x512xf32>
    %17 = arith.truncf %16 : vector<16x512xf32> to vector<16x512xbf16>
    %c0_12 = arith.constant 0 : index
    %c0_13 = arith.constant 0 : index
    %18 = vector.load %arg6[%c0_12, %c0_13] : memref<512x512xbf16, #tpu.memory_space<vmem>>, vector<512x512xbf16>
    %cst_14 = arith.constant dense<0.000000e+00> : vector<16x512xf32>
    %19 = tpu.matmul %17, %18, %cst_14 {dimension_numbers = #tpu.dot_dimension_numbers<[1], [0], [0], [1], [0, 0, 1, 1], [], []>} : vector<16x512xbf16>, vector<512x512xbf16>, vector<16x512xf32> -> vector<16x512xf32>
    %c0_15 = arith.constant 0 : index
    %c0_16 = arith.constant 0 : index
    %20 = vector.load %arg7[%c0_15, %c0_16] : memref<1x512xf32, #tpu.memory_space<vmem>>, vector<1x512xf32>
    %21 = vector.broadcast %20 : vector<1x512xf32> to vector<16x512xf32>
    %22 = arith.addf %19, %21 : vector<16x512xf32>
    %cst_17 = arith.constant 0.000000e+00 : f32
    %23 = vector.broadcast %cst_17 : f32 to vector<16x512xf32>
    %24 = arith.maximumf %22, %23 : vector<16x512xf32>
    %25 = arith.truncf %24 : vector<16x512xf32> to vector<16x512xbf16>
    %c0_18 = arith.constant 0 : index
    %c0_19 = arith.constant 0 : index
    %26 = vector.load %arg8[%c0_18, %c0_19] : memref<512x128xbf16, #tpu.memory_space<vmem>>, vector<512x128xbf16>
    %cst_20 = arith.constant dense<0.000000e+00> : vector<16x128xf32>
    %27 = tpu.matmul %25, %26, %cst_20 {dimension_numbers = #tpu.dot_dimension_numbers<[1], [0], [0], [1], [0, 0, 1, 1], [], []>} : vector<16x512xbf16>, vector<512x128xbf16>, vector<16x128xf32> -> vector<16x128xf32>
    %c0_21 = arith.constant 0 : index
    %c0_22 = arith.constant 0 : index
    %28 = vector.load %arg9[%c0_21, %c0_22] : memref<1x128xf32, #tpu.memory_space<vmem>>, vector<1x128xf32>
    %29 = vector.broadcast %28 : vector<1x128xf32> to vector<16x128xf32>
    %30 = arith.addf %27, %29 : vector<16x128xf32>
    %c0_23 = arith.constant 0 : index
    %c0_24 = arith.constant 0 : index
    %31 = vector.load %arg10[%c0_23, %c0_24] : memref<16x128xf32, #tpu.memory_space<vmem>>, vector<16x128xf32>
    tpu.vector_store %arg10[%c0_23, %c0_24], %30 {strides = array<i32>} : memref<16x128xf32, #tpu.memory_space<vmem>>, vector<16x128xf32>,
    return
  }
  func.func @transform_0(%arg0: i32) -> (i32, i32) {
    %c0_i32 = arith.constant 0 : i32
    %c0_i32_0 = arith.constant 0 : i32
    return %arg0, %c0_i32 : i32, i32
  }
  func.func @transform_1(%arg0: i32) -> (i32, i32) {
    %c0_i32 = arith.constant 0 : i32
    %c0_i32_0 = arith.constant 0 : i32
    %c0_i32_1 = arith.constant 0 : i32
    return %c0_i32, %c0_i32_0 : i32, i32
  }
  func.func @transform_2(%arg0: i32) -> (i32, i32) {
    %c0_i32 = arith.constant 0 : i32
    %c0_i32_0 = arith.constant 0 : i32
    %c0_i32_1 = arith.constant 0 : i32
    return %c0_i32, %c0_i32_0 : i32, i32
  }
  func.func @transform_3(%arg0: i32) -> (i32, i32) {
    %c0_i32 = arith.constant 0 : i32
    %c0_i32_0 = arith.constant 0 : i32
    %c0_i32_1 = arith.constant 0 : i32
    return %c0_i32, %c0_i32_0 : i32, i32
  }
  func.func @transform_4(%arg0: i32) -> (i32, i32) {
    %c0_i32 = arith.constant 0 : i32
    %c0_i32_0 = arith.constant 0 : i32
    %c0_i32_1 = arith.constant 0 : i32
    return %c0_i32, %c0_i32_0 : i32, i32
  }
  func.func @transform_5(%arg0: i32) -> (i32, i32) {
    %c0_i32 = arith.constant 0 : i32
    %c0_i32_0 = arith.constant 0 : i32
    %c0_i32_1 = arith.constant 0 : i32
    return %c0_i32, %c0_i32_0 : i32, i32
  }
  func.func @transform_6(%arg0: i32) -> (i32, i32) {
    %c0_i32 = arith.constant 0 : i32
    %c0_i32_0 = arith.constant 0 : i32
    %c0_i32_1 = arith.constant 0 : i32
    return %c0_i32, %c0_i32_0 : i32, i32
  }
  func.func @transform_7(%arg0: i32) -> (i32, i32) {
    %c0_i32 = arith.constant 0 : i32
    %c0_i32_0 = arith.constant 0 : i32
    %c0_i32_1 = arith.constant 0 : i32
    return %c0_i32, %c0_i32_0 : i32, i32
  }
  func.func @transform_8(%arg0: i32) -> (i32, i32) {
    %c0_i32 = arith.constant 0 : i32
    %c0_i32_0 = arith.constant 0 : i32
    %c0_i32_1 = arith.constant 0 : i32
    return %c0_i32, %c0_i32_0 : i32, i32
  }
  func.func @transform_9(%arg0: i32) -> (i32, i32) {
    %c0_i32 = arith.constant 0 : i32
    %c0_i32_0 = arith.constant 0 : i32
    return %arg0, %c0_i32 : i32, i32
  }
}

</mosaic_0001>

<bundles_post_ra>
// kernel: mlp_forward.1
= control target key start
LH: loop header
LB: loop body
LE: loop exit
PB: predicated region body
PF: predicated region fallthrough
CT: control target
= control target key end

     0   :  { %14 = vsyncpa [#allocation3], 0  ;;  %s3568_s0 = inlined_call_operand.vmem [shape: f32[16,32], index: 0, kind: input, shape index: {}]   ;;  %s3569_s1 = inlined_call_operand.hbm [shape: bf16[32,512], index: 1, kind: input, shape index: {}]   ;;  %s3570_s2 = inlined_call_operand.vmem [shape: f32[1,512], index: 2, kind: input, shape index: {}]   ;;  %s3571_s3 = inlined_call_operand.hbm [shape: bf16[512,512], index: 3, kind: input, shape index: {}]   ;;  %s3572_s4 = inlined_call_operand.vmem [shape: f32[1,512], index: 4, kind: input, shape index: {}]   ;;  %s3573_s5 = inlined_call_operand.hbm [shape: bf16[512,512], index: 5, kind: input, shape index: {}]   ;;  %s3574_s6 = inlined_call_operand.vmem [shape: f32[1,512], index: 6, kind: input, shape index: {}]   ;;  %s3575_s7 = inlined_call_operand.hbm [shape: bf16[512,128], index: 7, kind: input, shape index: {}]   ;;  %s3576_s8 = inlined_call_operand.vmem [shape: f32[1,128], index: 8, kind: input, shape index: {}]   ;;  %s3577_s9 = inlined_call_operand.vmem [shape: f32[16,128], index: 9, kind: output, shape index: {}]  }
   0x1   :  { %15 = vsyncpa [#allocation5], 0 }
   0x2   :  { %16 = vsyncpa [#allocation8], 0  ;;  %s3431_s30 = smov [#allocation4]   ;;  %s3432_s11 = smov [#allocation2]  }
   0x3   :  { %s38_s10 = sshll.u32 %s3431_s30, 4  ;;  %s24_s12 = sshll.u32 %s3432_s11, 4  ;;  %s39_s10 = int_to_ptr.vmem [resolvable:$true] %s38_s10  ;;  %s25_s12 = int_to_ptr.vmem [resolvable:$true] %s24_s12 }
   0x4   :  { %s3353_s13 = scalar_lea.vmem %s39_s10, 16384  ;;  %p3358_p1 = scmp.lt.s32.totalorder %s39_s10, %s39_s10 }
   0x5   :  { %p3354_p0 = scmp.ne.s32.totalorder %s39_s10, %s3353_s13  ;;  %p3359_p2 = scmp.lt.s32.totalorder %s3353_s13, %s3353_s13 }
   0x7   :  { %p3360_p3 = por %p3359_p2, %p3358_p1 }
   0x9   :  { %p3361_p4 = pnand %p3360_p3, %p3354_p0 }
   0xb   :  { %3364 = shalt.err (!%p3361_p4)
}
   0xc   :  { %s3433_s14 = smov 256   ;;  %s3434_s15 = smov 16  }
   0xd   :  { %44 = dma.hbm_to_vmem [thread:$0]  %s3571_s3, 16384, %s39_s10, [#allocation5], %s3433_s14, %s3433_s14, %s3434_s15  }
   0xe   :  { %s3373_s18 = scalar_lea.vmem %s25_s12, 1024  ;;  %p3378_p6 = scmp.lt.s32.totalorder %s25_s12, %s25_s12 }
   0xf   :  { %p3374_p5 = scmp.ne.s32.totalorder %s25_s12, %s3373_s18  ;;  %p3379_p7 = scmp.lt.s32.totalorder %s3373_s18, %s3373_s18 }
  0x11   :  { %p3380_p8 = por %p3379_p7, %p3378_p6 }
  0x13   :  { %p3381_p9 = pnand %p3380_p8, %p3374_p5 }
  0x15   :  { %3384 = shalt.err (!%p3381_p9)
}
  0x16   :  { %30 = dma.hbm_to_vmem [thread:$0]  %s3569_s1, 1024, %s25_s12, [#allocation3], %s3433_s14, %s3433_s14, %s3434_s15  }
  0x17   :  { %s3435_s21 = smov [#allocation6]   ;;  %s3436_s23 = smov [#allocation7]  }
  0x18   :  { %s52_s22 = sshll.u32 %s3435_s21, 4  ;;  %s66_s24 = sshll.u32 %s3436_s23, 4  ;;  %s53_s22 = int_to_ptr.vmem [resolvable:$true] %s52_s22  ;;  %s67_s24 = int_to_ptr.vmem [resolvable:$true] %s66_s24 }
  0x19   :  { %s3393_s25 = scalar_lea.vmem %s53_s22, 16384  ;;  %p3398_p11 = scmp.lt.s32.totalorder %s53_s22, %s53_s22 }
  0x1a   :  { %p3394_p10 = scmp.ne.s32.totalorder %s53_s22, %s3393_s25  ;;  %p3399_p12 = scmp.lt.s32.totalorder %s3393_s25, %s3393_s25 }
  0x1c   :  { %p3400_p13 = por %p3399_p12, %p3398_p11 }
  0x1e   :  { %p3401_p0 = pnand %p3400_p13, %p3394_p10 }
  0x20   :  { %3404 = shalt.err (!%p3401_p0)
}
  0x21   :  { %58 = dma.hbm_to_vmem [thread:$0]  %s3573_s5, 16384, %s53_s22, [#allocation5], %s3433_s14, %s3433_s14, %s3434_s15  }
  0x22   :  { %s3413_s27 = scalar_lea.vmem %s67_s24, 4096  ;;  %p3418_p2 = scmp.lt.s32.totalorder %s67_s24, %s67_s24 }
  0x23   :  { %p3414_p1 = scmp.ne.s32.totalorder %s67_s24, %s3413_s27  ;;  %p3419_p3 = scmp.lt.s32.totalorder %s3413_s27, %s3413_s27 }
  0x25   :  { %p3420_p4 = por %p3419_p3, %p3418_p2 }
  0x27   :  { %p3421_p5 = pnand %p3420_p4, %p3414_p1 }
  0x29   :  { %3424 = shalt.err (!%p3421_p5)
}
  0x2a   :  { %s3437_s1 = smov 64   ;;  %s3438_s28 = smov 4  }
  0x2b   :  { %72 = dma.hbm_to_vmem [thread:$0]  %s3575_s7, 4096, %s67_s24, [#allocation8], %s3437_s1, %s3437_s1, %s3438_s28  }
  0x2c   :  { %3425 = dma.done.wait [#allocation3], 1024  }
  0x2d   :  { %3426 = vsyncadd [#allocation3], 4294966272 }
  0x2e   :  { %3427 = dma.done.wait [#allocation5], 32768  }
  0x2f   :  { %3428 = vsyncadd [#allocation5], 4294934528 }
  0x30   :  { %3429 = dma.done.wait [#allocation8], 4096  }
  0x31   :  { %3430 = vsyncadd [#allocation8], 4294963200  ;;  %v3439_v0 = vmov 0   ;;  %v2917_v1 = vld [vmem:[#allocation2 + $0x24] ss:$16 sps:$4 sm:$0xff]   ;;  %v89_v10 = vld [vmem:[%s3568_s0 + $0x8] sm:$0xff] }
  0x32   :  { %197 = vmatprep.mubr.bf16.mxu0 %v3439_v0  ;;  %240 = vmatprep.mubr.bf16.mxu1 %v3439_v0  ;;  %v2919_v2 = vld [vmem:[#allocation2 + $0x2c] ss:$16 sps:$4 sm:$0xff]   ;;  %v2921_v3 = vld [vmem:[#allocation2 + $0x20] ss:$16 sps:$4 sm:$0xff]   ;;  %v2922_v4 = vld [vmem:[#allocation2 + $0x28] ss:$16 sps:$4 sm:$0xff]  }
  0x33   :  { %177 = vmatprep.subr.bf16.mxu0 %v2917_v1  ;;  %220 = vmatprep.subr.bf16.mxu1 %v2919_v2  ;;  %v2923_v5 = vld [vmem:[#allocation2 + $0x4] ss:$16 sps:$4 sm:$0xff]   ;;  %v2925_v6 = vld [vmem:[#allocation2 + $0xc] ss:$16 sps:$4 sm:$0xff]   ;;  %v2927_v7 = vld [vmem:[#allocation2] ss:$16 sps:$4 sm:$0xff]  }
  0x34   :  { %178 = vmatpush1.bf16.msra.mxu0 %v2921_v3  ;;  %221 = vmatpush1.bf16.msra.mxu1 %v2922_v4  ;;  %v2928_v8 = vld [vmem:[#allocation2 + $0x8] ss:$16 sps:$4 sm:$0xff]   ;;  %v88_v9 = vld [vmem:[%s3568_s0] sm:$0xff]  ;;  %vm161_vm0 = vcmask 261120  }
  0x35   :  { %179 = vmatprep.subr.bf16.mxu0 %v2923_v5  ;;  %222 = vmatprep.subr.bf16.mxu1 %v2925_v6  ;;  %v2929_v11 = vld [vmem:[#allocation4 + $0xe0] ss:$16 sps:$4 sm:$0xff]   ;;  %v90_v12 = vpack.c.bf16 %v89_v10, %v88_v9  ;;  %v2931_v13 = vld [vmem:[#allocation4 + $0xe4] ss:$16 sps:$4 sm:$0xff]  }
  0x36   :  { %v2932_v14 = vld [vmem:[#allocation4 + $0x2e0] ss:$16 sps:$4 sm:$0xff]   ;;  %v2934_v15 = vld [vmem:[#allocation4 + $0x2e4] ss:$16 sps:$4 sm:$0xff]  }
  0x37   :  { %v2937_v16 = vld [vmem:[#allocation4 + $0xc4] ss:$16 sps:$4 sm:$0xff]   ;;  %v2935_v18 = vld [vmem:[#allocation4 + $0xc0] ss:$16 sps:$4 sm:$0xff]  }
  0x38   :  { %180 = vmatpush1.bf16.msra.mxu0 %v2927_v7  ;;  %223 = vmatpush1.bf16.msra.mxu1 %v2928_v8  ;;  %v2940_v17 = vld [vmem:[#allocation4 + $0x2c4] ss:$16 sps:$4 sm:$0xff]   ;;  %v2938_v19 = vld [vmem:[#allocation4 + $0x2c0] ss:$16 sps:$4 sm:$0xff]  }
  0x39   :  { %1053 = vmatprep.subr.bf16.mxu0 %v2931_v13  ;;  %1096 = vmatprep.subr.bf16.mxu1 %v2934_v15  ;;  %v2943_v20 = vld [vmem:[#allocation4 + $0xa4] ss:$16 sps:$4 sm:$0xff]   ;;  %v2941_v22 = vld [vmem:[#allocation4 + $0xa0] ss:$16 sps:$4 sm:$0xff]   ;;  %v3030_v13 = vld [vmem:[#allocation4 + $0x2ec] ss:$16 sps:$4 sm:$0xff]  }
  0x3a   :  { %v2946_v21 = vld [vmem:[#allocation4 + $0x2a4] ss:$16 sps:$4 sm:$0xff]   ;;  %v2944_v23 = vld [vmem:[#allocation4 + $0x2a0] ss:$16 sps:$4 sm:$0xff]  }
  0x3b   :  { %2573 = vmatmul.mubr.msk.bf16.vlgmr.msra.gmra.mxu0 %vm161_vm0, %v90_v12  ;;  %2574 = vmatmul.mubr.msk.bf16.vlgmr.msra.gmra.mxu1 %vm161_vm0, %v90_v12  ;;  %v2949_v24 = vld [vmem:[#allocation4 + $0x84] ss:$16 sps:$4 sm:$0xff]   ;;  %v2947_v26 = vld [vmem:[#allocation4 + $0x80] ss:$16 sps:$4 sm:$0xff]   ;;  %v3027_v12 = vld [vmem:[#allocation4 + $0xec] ss:$16 sps:$4 sm:$0xff]  }
  0x3c   :  { %1054 = vmatpush1.bf16.msra.mxu0 %v2929_v11  ;;  %1097 = vmatpush1.bf16.msra.mxu1 %v2932_v14  ;;  %v2952_v25 = vld [vmem:[#allocation4 + $0x284] ss:$16 sps:$4 sm:$0xff]   ;;  %v2950_v27 = vld [vmem:[#allocation4 + $0x280] ss:$16 sps:$4 sm:$0xff]   ;;  %v101_v14 = vlaneseq }
  0x3d   :  { %1055 = vmatprep.subr.bf16.mxu0 %v2937_v16  ;;  %1098 = vmatprep.subr.bf16.mxu1 %v2940_v17  ;;  %v2955_v28 = vld [vmem:[#allocation4 + $0x64] ss:$16 sps:$4 sm:$0xff]   ;;  %v2953_v30 = vld [vmem:[#allocation4 + $0x60] ss:$16 sps:$4 sm:$0xff]  }
  0x3e   :  { %v2958_v29 = vld [vmem:[#allocation4 + $0x264] ss:$16 sps:$4 sm:$0xff]   ;;  %v2956_v31 = vld [vmem:[#allocation4 + $0x260] ss:$16 sps:$4 sm:$0xff]   ;;  %v102_v15 = vshrl.u32 %v101_v14, 7 }
  0x3f   :  { %v2961_v32 = vld [vmem:[#allocation4 + $0x44] ss:$16 sps:$4 sm:$0xff]   ;;  %v2959_v34 = vld [vmem:[#allocation4 + $0x40] ss:$16 sps:$4 sm:$0xff]   ;;  %v3064_v14 = vld [vmem:[#allocation4 + $0x228] ss:$16 sps:$4 sm:$0xff]  }
  0x40   :  { %1056 = vmatpush1.bf16.msra.mxu0 %v2935_v18  ;;  %1099 = vmatpush1.bf16.msra.mxu1 %v2938_v19  ;;  %v2964_v33 = vld [vmem:[#allocation4 + $0x244] ss:$16 sps:$4 sm:$0xff]   ;;  %v2962_v35 = vld [vmem:[#allocation4 + $0x240] ss:$16 sps:$4 sm:$0xff]   ;;  %v3508_v16 = vsub.s32 1, %v102_v15  ;;  %v3510_v17 = vsub.s32 3, %v102_v15 }
  0x41   :  { %1057 = vmatprep.subr.bf16.mxu0 %v2943_v20  ;;  %1100 = vmatprep.subr.bf16.mxu1 %v2946_v21  ;;  %v2967_v36 = vld [vmem:[#allocation4 + $0x24] ss:$16 sps:$4 sm:$0xff]   ;;  %v2965_v38 = vld [vmem:[#allocation4 + $0x20] ss:$16 sps:$4 sm:$0xff]   ;;  %v3512_v18 = vsub.s32 0, %v102_v15  ;;  %v3514_v19 = vsub.s32 2, %v102_v15 }
  0x42   :  { %v2970_v37 = vld [vmem:[#allocation4 + $0x224] ss:$16 sps:$4 sm:$0xff]   ;;  %v2968_v39 = vld [vmem:[#allocation4 + $0x220] ss:$16 sps:$4 sm:$0xff]   ;;  %v3069_v15 = vld [vmem:[#allocation4 + $0xc] ss:$16 sps:$4 sm:$0xff]  }
  0x43   :  { %v2973_v40 = vld [vmem:[#allocation4 + $0x4] ss:$16 sps:$4 sm:$0xff]   ;;  %v2971_v42 = vld [vmem:[#allocation4] ss:$16 sps:$4 sm:$0xff]  }
  0x44   :  { %1058 = vmatpush1.bf16.msra.mxu0 %v2941_v22  ;;  %1101 = vmatpush1.bf16.msra.mxu1 %v2944_v23  ;;  %v2976_v41 = vld [vmem:[#allocation4 + $0x204] ss:$16 sps:$4 sm:$0xff]   ;;  %v2974_v43 = vld [vmem:[#allocation4 + $0x200] ss:$16 sps:$4 sm:$0xff]  }
  0x45   :  { %1059 = vmatprep.subr.bf16.mxu0 %v2949_v24  ;;  %1102 = vmatprep.subr.bf16.mxu1 %v2952_v25  ;;  %v2979_v44 = vld [vmem:[#allocation4 + $0x1e4] ss:$16 sps:$4 sm:$0xff]   ;;  %v2977_v46 = vld [vmem:[#allocation4 + $0x1e0] ss:$16 sps:$4 sm:$0xff]  }
  0x46   :  { %v2982_v45 = vld [vmem:[#allocation4 + $0x3e4] ss:$16 sps:$4 sm:$0xff]   ;;  %v2980_v47 = vld [vmem:[#allocation4 + $0x3e0] ss:$16 sps:$4 sm:$0xff]  }
  0x47   :  { %v2985_v48 = vld [vmem:[#allocation4 + $0x1c4] ss:$16 sps:$4 sm:$0xff]   ;;  %v2983_v50 = vld [vmem:[#allocation4 + $0x1c0] ss:$16 sps:$4 sm:$0xff]  }
  0x48   :  { %1060 = vmatpush1.bf16.msra.mxu0 %v2947_v26  ;;  %1103 = vmatpush1.bf16.msra.mxu1 %v2950_v27  ;;  %v2988_v49 = vld [vmem:[#allocation4 + $0x3c4] ss:$16 sps:$4 sm:$0xff]   ;;  %v2986_v51 = vld [vmem:[#allocation4 + $0x3c0] ss:$16 sps:$4 sm:$0xff]  }
  0x49   :  { %1061 = vmatprep.subr.bf16.mxu0 %v2955_v28  ;;  %1104 = vmatprep.subr.bf16.mxu1 %v2958_v29  ;;  %v2991_v52 = vld [vmem:[#allocation4 + $0x1a4] ss:$16 sps:$4 sm:$0xff]   ;;  %v2989_v54 = vld [vmem:[#allocation4 + $0x1a0] ss:$16 sps:$4 sm:$0xff]  }
  0x4a   :  { %v2994_v53 = vld [vmem:[#allocation4 + $0x3a4] ss:$16 sps:$4 sm:$0xff]   ;;  %v2992_v55 = vld [vmem:[#allocation4 + $0x3a0] ss:$16 sps:$4 sm:$0xff]  }
  0x4b   :  { %v2997_v56 = vld [vmem:[#allocation4 + $0x184] ss:$16 sps:$4 sm:$0xff]   ;;  %v2995_v58 = vld [vmem:[#allocation4 + $0x180] ss:$16 sps:$4 sm:$0xff]  }
  0x4c   :  { %1062 = vmatpush1.bf16.msra.mxu0 %v2953_v30  ;;  %1105 = vmatpush1.bf16.msra.mxu1 %v2956_v31  ;;  %v3000_v57 = vld [vmem:[#allocation4 + $0x384] ss:$16 sps:$4 sm:$0xff]   ;;  %v2998_v59 = vld [vmem:[#allocation4 + $0x380] ss:$16 sps:$4 sm:$0xff]  }
  0x4d   :  { %1063 = vmatprep.subr.bf16.mxu0 %v2961_v32  ;;  %1106 = vmatprep.subr.bf16.mxu1 %v2964_v33  ;;  %v3003_v60 = vld [vmem:[#allocation4 + $0x164] ss:$16 sps:$4 sm:$0xff]   ;;  %v3001_v62 = vld [vmem:[#allocation4 + $0x160] ss:$16 sps:$4 sm:$0xff]  }
  0x4e   :  { %v3006_v61 = vld [vmem:[#allocation4 + $0x364] ss:$16 sps:$4 sm:$0xff]   ;;  %v3004_v63 = vld [vmem:[#allocation4 + $0x360] ss:$16 sps:$4 sm:$0xff]  }
  0x4f   :  { %v3009_v0 = vld [vmem:[#allocation4 + $0x144] ss:$16 sps:$4 sm:$0xff]   ;;  %v3007_v2 = vld [vmem:[#allocation4 + $0x140] ss:$16 sps:$4 sm:$0xff]  }
  0x50   :  { %1064 = vmatpush1.bf16.msra.mxu0 %v2959_v34  ;;  %1107 = vmatpush1.bf16.msra.mxu1 %v2962_v35  ;;  %v3012_v1 = vld [vmem:[#allocation4 + $0x344] ss:$16 sps:$4 sm:$0xff]   ;;  %v3010_v3 = vld [vmem:[#allocation4 + $0x340] ss:$16 sps:$4 sm:$0xff]  }
  0x51   :  { %1065 = vmatprep.subr.bf16.mxu0 %v2967_v36  ;;  %1108 = vmatprep.subr.bf16.mxu1 %v2970_v37  ;;  %v3015_v4 = vld [vmem:[#allocation4 + $0x124] ss:$16 sps:$4 sm:$0xff]   ;;  %v3013_v6 = vld [vmem:[#allocation4 + $0x120] ss:$16 sps:$4 sm:$0xff]  }
  0x52   :  { %v3018_v5 = vld [vmem:[#allocation4 + $0x324] ss:$16 sps:$4 sm:$0xff]   ;;  %v3016_v7 = vld [vmem:[#allocation4 + $0x320] ss:$16 sps:$4 sm:$0xff]  }
  0x53   :  { %v3021_v8 = vld [vmem:[#allocation4 + $0x104] ss:$16 sps:$4 sm:$0xff]   ;;  %v3019_v10 = vld [vmem:[#allocation4 + $0x100] ss:$16 sps:$4 sm:$0xff]  }
  0x54   :  { %1066 = vmatpush1.bf16.msra.mxu0 %v2965_v38  ;;  %1109 = vmatpush1.bf16.msra.mxu1 %v2968_v39  ;;  %v3024_v9 = vld [vmem:[#allocation4 + $0x304] ss:$16 sps:$4 sm:$0xff]   ;;  %v3022_v11 = vld [vmem:[#allocation4 + $0x300] ss:$16 sps:$4 sm:$0xff]  }
  0x55   :  { %1067 = vmatprep.subr.bf16.mxu0 %v2973_v40  ;;  %1110 = vmatprep.subr.bf16.mxu1 %v2976_v41  ;;  %v99_v20 = vld [vmem:[%s3570_s2] sm:$0xf] }
  0x56   :  { %v108_v23 = vrot.slane %v99_v20, %v3508_v16  ;;  %v116_v24 = vrot.slane %v99_v20, %v3510_v17  ;;  %v104_v25 = vrot.slane %v99_v20, %v3512_v18  ;;  %v112_v26 = vrot.slane %v99_v20, %v3514_v19  ;;  %v3072_v20 = vld [vmem:[#allocation4 + $0x20c] ss:$16 sps:$4 sm:$0xff]  }
  0x58   :  { %1068 = vmatpush1.bf16.msra.mxu0 %v2971_v42  ;;  %1111 = vmatpush1.bf16.msra.mxu1 %v2974_v43 }
  0x59   :  { %1069 = vmatprep.subr.bf16.mxu0 %v2979_v44  ;;  %1112 = vmatprep.subr.bf16.mxu1 %v2982_v45 }
  0x5c   :  { %1070 = vmatpush2.bf16.msra.mxu0 %v2977_v46  ;;  %1113 = vmatpush2.bf16.msra.mxu1 %v2980_v47 }
  0x5d   :  { %1071 = vmatprep.subr.bf16.mxu0 %v2985_v48  ;;  %1114 = vmatprep.subr.bf16.mxu1 %v2988_v49 }
  0x60   :  { %1072 = vmatpush2.bf16.msra.mxu0 %v2983_v50  ;;  %1115 = vmatpush2.bf16.msra.mxu1 %v2986_v51  ;;  %v3025_v51 = vld [vmem:[#allocation4 + $0xe8] ss:$16 sps:$4 sm:$0xff]  }
  0x61   :  { %1073 = vmatprep.subr.bf16.mxu0 %v2991_v52  ;;  %1116 = vmatprep.subr.bf16.mxu1 %v2994_v53  ;;  %v3028_v52 = vld [vmem:[#allocation4 + $0x2e8] ss:$16 sps:$4 sm:$0xff]  }
  0x64   :  { %1074 = vmatpush2.bf16.msra.mxu0 %v2989_v54  ;;  %1117 = vmatpush2.bf16.msra.mxu1 %v2992_v55  ;;  %v3033_v55 = vld [vmem:[#allocation4 + $0xcc] ss:$16 sps:$4 sm:$0xff]  }
  0x65   :  { %1075 = vmatprep.subr.bf16.mxu0 %v2997_v56  ;;  %1118 = vmatprep.subr.bf16.mxu1 %v3000_v57  ;;  %v3036_v56 = vld [vmem:[#allocation4 + $0x2cc] ss:$16 sps:$4 sm:$0xff]   ;;  %v3031_v57 = vld [vmem:[#allocation4 + $0xc8] ss:$16 sps:$4 sm:$0xff]  }
  0x68   :  { %1076 = vmatpush2.bf16.msra.mxu0 %v2995_v58  ;;  %1119 = vmatpush2.bf16.msra.mxu1 %v2998_v59  ;;  %v3034_v58 = vld [vmem:[#allocation4 + $0x2c8] ss:$16 sps:$4 sm:$0xff]   ;;  %v3039_v59 = vld [vmem:[#allocation4 + $0xac] ss:$16 sps:$4 sm:$0xff]  }
  0x69   :  { %1077 = vmatprep.subr.bf16.mxu0 %v3003_v60  ;;  %1120 = vmatprep.subr.bf16.mxu1 %v3006_v61  ;;  %v3042_v60 = vld [vmem:[#allocation4 + $0x2ac] ss:$16 sps:$4 sm:$0xff]   ;;  %v3037_v61 = vld [vmem:[#allocation4 + $0xa8] ss:$16 sps:$4 sm:$0xff]  }
  0x6c   :  { %1078 = vmatpush2.bf16.msra.mxu0 %v3001_v62  ;;  %1121 = vmatpush2.bf16.msra.mxu1 %v3004_v63  ;;  %v3040_v62 = vld [vmem:[#allocation4 + $0x2a8] ss:$16 sps:$4 sm:$0xff]   ;;  %v3045_v63 = vld [vmem:[#allocation4 + $0x8c] ss:$16 sps:$4 sm:$0xff]  }
  0x6d   :  { %1079 = vmatprep.subr.bf16.mxu0 %v3009_v0  ;;  %1122 = vmatprep.subr.bf16.mxu1 %v3012_v1  ;;  %v3048_v0 = vld [vmem:[#allocation4 + $0x28c] ss:$16 sps:$4 sm:$0xff]   ;;  %v3043_v1 = vld [vmem:[#allocation4 + $0x88] ss:$16 sps:$4 sm:$0xff]  }
  0x70   :  { %1080 = vmatpush2.bf16.msra.mxu0 %v3007_v2  ;;  %1123 = vmatpush2.bf16.msra.mxu1 %v3010_v3  ;;  %v3046_v2 = vld [vmem:[#allocation4 + $0x288] ss:$16 sps:$4 sm:$0xff]   ;;  %v3051_v3 = vld [vmem:[#allocation4 + $0x6c] ss:$16 sps:$4 sm:$0xff]  }
  0x71   :  { %1081 = vmatprep.subr.bf16.mxu0 %v3015_v4  ;;  %1124 = vmatprep.subr.bf16.mxu1 %v3018_v5  ;;  %v3054_v4 = vld [vmem:[#allocation4 + $0x26c] ss:$16 sps:$4 sm:$0xff]   ;;  %v3049_v5 = vld [vmem:[#allocation4 + $0x68] ss:$16 sps:$4 sm:$0xff]  }
  0x74   :  { %1082 = vmatpush2.bf16.msra.mxu0 %v3013_v6  ;;  %1125 = vmatpush2.bf16.msra.mxu1 %v3016_v7  ;;  %v3052_v6 = vld [vmem:[#allocation4 + $0x268] ss:$16 sps:$4 sm:$0xff]   ;;  %v3057_v7 = vld [vmem:[#allocation4 + $0x4c] ss:$16 sps:$4 sm:$0xff]  }
  0x75   :  { %1083 = vmatprep.subr.bf16.mxu0 %v3021_v8  ;;  %1126 = vmatprep.subr.bf16.mxu1 %v3024_v9  ;;  %v3060_v8 = vld [vmem:[#allocation4 + $0x24c] ss:$16 sps:$4 sm:$0xff]   ;;  %v3055_v9 = vld [vmem:[#allocation4 + $0x48] ss:$16 sps:$4 sm:$0xff]  }
  0x78   :  { %1084 = vmatpush2.bf16.msra.mxu0 %v3019_v10  ;;  %1127 = vmatpush2.bf16.msra.mxu1 %v3022_v11  ;;  %v3058_v10 = vld [vmem:[#allocation4 + $0x248] ss:$16 sps:$4 sm:$0xff]   ;;  %v3063_v11 = vld [vmem:[#allocation4 + $0x2c] ss:$16 sps:$4 sm:$0xff]  }
  0x79   :  { %1139 = vmatprep.subr.bf16.mxu0 %v3027_v12  ;;  %1182 = vmatprep.subr.bf16.mxu1 %v3030_v13  ;;  %v3066_v12 = vld [vmem:[#allocation4 + $0x22c] ss:$16 sps:$4 sm:$0xff]   ;;  %v3061_v13 = vld [vmem:[#allocation4 + $0x28] ss:$16 sps:$4 sm:$0xff]  }
  0xfb   :  { %v199_v21 = vpop.f32.mrf.mxu0  ;;  %v242_v22 = vpop.f32.mrf.mxu1 }
  0xfc   :  { %v200_v35 = vadd.f32 %v199_v21, %v104_v25  ;;  %v243_v36 = vadd.f32 %v242_v22, %v112_v26  ;;  %v3067_v21 = vld [vmem:[#allocation4 + $0x8] ss:$16 sps:$4 sm:$0xff]  }
  0xfd   :  { %v201_v27 = vpop.f32.mrf.mxu0  ;;  %v244_v28 = vpop.f32.mrf.mxu1  ;;  %v3070_v22 = vld [vmem:[#allocation4 + $0x208] ss:$16 sps:$4 sm:$0xff]  }
  0xfe   :  { %v202_v31 = vadd.f32 %v201_v27, %v108_v23  ;;  %v245_v32 = vadd.f32 %v244_v28, %v116_v24  ;;  %v251_v47 = vmax.f32 %v200_v35, 0.0  ;;  %v253_v48 = vmax.f32 %v243_v36, 0.0  ;;  %v3081_v27 = vld [vmem:[#allocation4 + $0x1cc] ss:$16 sps:$4 sm:$0xff]  }
  0xff   :  { %v203_v29 = vpop.f32.mrf.mxu0  ;;  %v246_v30 = vpop.f32.mrf.mxu1  ;;  %v3084_v28 = vld [vmem:[#allocation4 + $0x3cc] ss:$16 sps:$4 sm:$0xff]  }
 0x100   :  { %v204_v33 = vadd.f32 %v203_v29, %v104_v25  ;;  %v247_v34 = vadd.f32 %v246_v30, %v112_v26  ;;  %v252_v43 = vmax.f32 %v202_v31, 0.0  ;;  %v254_v44 = vmax.f32 %v245_v32, 0.0  ;;  %v3073_v25 = vld [vmem:[#allocation4 + $0x1e8] ss:$16 sps:$4 sm:$0xff]   ;;  %v3087_v31 = vld [vmem:[#allocation4 + $0x1ac] ss:$16 sps:$4 sm:$0xff]  }
 0x101   :  { %v205_v37 = vpop.f32.mrf.mxu0  ;;  %v248_v38 = vpop.f32.mrf.mxu1  ;;  %v3076_v26 = vld [vmem:[#allocation4 + $0x3e8] ss:$16 sps:$4 sm:$0xff]   ;;  %v3090_v32 = vld [vmem:[#allocation4 + $0x3ac] ss:$16 sps:$4 sm:$0xff]  }
 0x102   :  { %v206_v39 = vadd.f32 %v205_v37, %v108_v23  ;;  %v249_v40 = vadd.f32 %v248_v38, %v116_v24  ;;  %v255_v41 = vmax.f32 %v204_v33, 0.0  ;;  %v257_v42 = vmax.f32 %v247_v34, 0.0  ;;  %v3075_v23 = vld [vmem:[#allocation4 + $0x1ec] ss:$16 sps:$4 sm:$0xff]   ;;  %v3079_v29 = vld [vmem:[#allocation4 + $0x1c8] ss:$16 sps:$4 sm:$0xff]  }
 0x103   :  { %v3078_v24 = vld [vmem:[#allocation4 + $0x3ec] ss:$16 sps:$4 sm:$0xff]   ;;  %v3082_v30 = vld [vmem:[#allocation4 + $0x3c8] ss:$16 sps:$4 sm:$0xff]  }
 0x104   :  { %v256_v45 = vmax.f32 %v206_v39, 0.0  ;;  %v258_v46 = vmax.f32 %v249_v40, 0.0  ;;  %v3523_v53 = vpack.c.bf16 %v255_v41, %v251_v47  ;;  %v3525_v54 = vpack.c.bf16 %v257_v42, %v253_v48  ;;  %v3085_v33 = vld [vmem:[#allocation4 + $0x1a8] ss:$16 sps:$4 sm:$0xff]   ;;  %v3093_v35 = vld [vmem:[#allocation4 + $0x18c] ss:$16 sps:$4 sm:$0xff]  }
 0x105   :  { %v3088_v34 = vld [vmem:[#allocation4 + $0x3a8] ss:$16 sps:$4 sm:$0xff]   ;;  %v3096_v36 = vld [vmem:[#allocation4 + $0x38c] ss:$16 sps:$4 sm:$0xff]  }
 0x106   :  { %v260_v49 = vpack.c.bf16 %v256_v45, %v252_v43  ;;  %v262_v50 = vpack.c.bf16 %v258_v46, %v254_v44  ;;  %v3091_v37 = vld [vmem:[#allocation4 + $0x188] ss:$16 sps:$4 sm:$0xff]   ;;  %v3099_v39 = vld [vmem:[#allocation4 + $0x16c] ss:$16 sps:$4 sm:$0xff]  }
 0x107   :  { %v3094_v38 = vld [vmem:[#allocation4 + $0x388] ss:$16 sps:$4 sm:$0xff]   ;;  %v3102_v40 = vld [vmem:[#allocation4 + $0x36c] ss:$16 sps:$4 sm:$0xff]  }
 0x108   :  { %1085 = vmatprep.mubr.bf16.mxu0 %v260_v49  ;;  %1128 = vmatprep.mubr.bf16.mxu1 %v262_v50  ;;  %v3097_v41 = vld [vmem:[#allocation4 + $0x168] ss:$16 sps:$4 sm:$0xff]   ;;  %v3105_v43 = vld [vmem:[#allocation4 + $0x14c] ss:$16 sps:$4 sm:$0xff]  }
 0x109   :  { %1086 = vmatmul.mubr.bf16.vlgmr.msra.gmra.mxu0 %v3523_v53  ;;  %1129 = vmatmul.mubr.bf16.vlgmr.msra.gmra.mxu1 %v3525_v54  ;;  %v3100_v42 = vld [vmem:[#allocation4 + $0x368] ss:$16 sps:$4 sm:$0xff]   ;;  %v3108_v44 = vld [vmem:[#allocation4 + $0x34c] ss:$16 sps:$4 sm:$0xff]  }
 0x10a   :  { %1140 = vmatpush1.bf16.msra.mxu0 %v3025_v51  ;;  %1183 = vmatpush1.bf16.msra.mxu1 %v3028_v52  ;;  %v3103_v45 = vld [vmem:[#allocation4 + $0x148] ss:$16 sps:$4 sm:$0xff]   ;;  %v3111_v47 = vld [vmem:[#allocation4 + $0x12c] ss:$16 sps:$4 sm:$0xff]  }
 0x10b   :  { %1171 = vmatprep.mubr.bf16.mxu0 %v260_v49  ;;  %1214 = vmatprep.mubr.bf16.mxu1 %v262_v50  ;;  %v3106_v46 = vld [vmem:[#allocation4 + $0x348] ss:$16 sps:$4 sm:$0xff]   ;;  %v3114_v48 = vld [vmem:[#allocation4 + $0x32c] ss:$16 sps:$4 sm:$0xff]  }
 0x10c   :  { %1141 = vmatprep.subr.bf16.mxu0 %v3033_v55  ;;  %1184 = vmatprep.subr.bf16.mxu1 %v3036_v56  ;;  %v3109_v49 = vld [vmem:[#allocation4 + $0x128] ss:$16 sps:$4 sm:$0xff]   ;;  %v3117_v51 = vld [vmem:[#allocation4 + $0x10c] ss:$16 sps:$4 sm:$0xff]  }
 0x10d   :  { %v3112_v50 = vld [vmem:[#allocation4 + $0x328] ss:$16 sps:$4 sm:$0xff]   ;;  %v3120_v52 = vld [vmem:[#allocation4 + $0x30c] ss:$16 sps:$4 sm:$0xff]  }
 0x10e   :  { %1142 = vmatpush1.bf16.msra.mxu0 %v3031_v57  ;;  %1185 = vmatpush1.bf16.msra.mxu1 %v3034_v58  ;;  %v3115_v55 = vld [vmem:[#allocation4 + $0x108] ss:$16 sps:$4 sm:$0xff]   ;;  %v3123_v57 = vld [vmem:[#allocation6 + $0xe4] ss:$16 sps:$4 sm:$0xff]   ;;  %v3121_v58 = vld [vmem:[#allocation6 + $0xe0] ss:$16 sps:$4 sm:$0xff]  }
 0x10f   :  { %1143 = vmatprep.subr.bf16.mxu0 %v3039_v59  ;;  %1186 = vmatprep.subr.bf16.mxu1 %v3042_v60  ;;  %v3118_v56 = vld [vmem:[#allocation4 + $0x308] ss:$16 sps:$4 sm:$0xff]   ;;  %v3126_v59 = vld [vmem:[#allocation6 + $0xc4] ss:$16 sps:$4 sm:$0xff]   ;;  %v3124_v60 = vld [vmem:[#allocation6 + $0xc0] ss:$16 sps:$4 sm:$0xff]  }
 0x112   :  { %1144 = vmatpush1.bf16.msra.mxu0 %v3037_v61  ;;  %1187 = vmatpush1.bf16.msra.mxu1 %v3040_v62  ;;  %v3129_v61 = vld [vmem:[#allocation6 + $0xa4] ss:$16 sps:$4 sm:$0xff]   ;;  %v3127_v62 = vld [vmem:[#allocation6 + $0xa0] ss:$16 sps:$4 sm:$0xff]  }
 0x113   :  { %1145 = vmatprep.subr.bf16.mxu0 %v3045_v63  ;;  %1188 = vmatprep.subr.bf16.mxu1 %v3048_v0  ;;  %v3132_v63 = vld [vmem:[#allocation6 + $0x84] ss:$16 sps:$4 sm:$0xff]   ;;  %v3130_v0 = vld [vmem:[#allocation6 + $0x80] ss:$16 sps:$4 sm:$0xff]  }
 0x116   :  { %1146 = vmatpush1.bf16.msra.mxu0 %v3043_v1  ;;  %1189 = vmatpush1.bf16.msra.mxu1 %v3046_v2  ;;  %v3135_v1 = vld [vmem:[#allocation6 + $0x64] ss:$16 sps:$4 sm:$0xff]   ;;  %v3133_v2 = vld [vmem:[#allocation6 + $0x60] ss:$16 sps:$4 sm:$0xff]  }
 0x117   :  { %1147 = vmatprep.subr.bf16.mxu0 %v3051_v3  ;;  %1190 = vmatprep.subr.bf16.mxu1 %v3054_v4  ;;  %v3169_v3 = vld [vmem:[#allocation6 + $0x2e0] ss:$16 sps:$4 sm:$0xff]   ;;  %v3171_v4 = vld [vmem:[#allocation6 + $0x2e4] ss:$16 sps:$4 sm:$0xff]  }
 0x11a   :  { %1148 = vmatpush1.bf16.msra.mxu0 %v3049_v5  ;;  %1191 = vmatpush1.bf16.msra.mxu1 %v3052_v6  ;;  %v3175_v5 = vld [vmem:[#allocation6 + $0x2c0] ss:$16 sps:$4 sm:$0xff]   ;;  %v3177_v6 = vld [vmem:[#allocation6 + $0x2c4] ss:$16 sps:$4 sm:$0xff]  }
 0x11b   :  { %1149 = vmatprep.subr.bf16.mxu0 %v3057_v7  ;;  %1192 = vmatprep.subr.bf16.mxu1 %v3060_v8  ;;  %v3141_v7 = vld [vmem:[#allocation6 + $0x24] ss:$16 sps:$4 sm:$0xff]   ;;  %v3139_v8 = vld [vmem:[#allocation6 + $0x20] ss:$16 sps:$4 sm:$0xff]  }
 0x11e   :  { %1150 = vmatpush1.bf16.msra.mxu0 %v3055_v9  ;;  %1193 = vmatpush1.bf16.msra.mxu1 %v3058_v10  ;;  %v3181_v9 = vld [vmem:[#allocation6 + $0x2a0] ss:$16 sps:$4 sm:$0xff]   ;;  %v3183_v10 = vld [vmem:[#allocation6 + $0x2a4] ss:$16 sps:$4 sm:$0xff]  }
 0x11f   :  { %1151 = vmatprep.subr.bf16.mxu0 %v3063_v11  ;;  %1194 = vmatprep.subr.bf16.mxu1 %v3066_v12  ;;  %v3144_v11 = vld [vmem:[#allocation6 + $0x4] ss:$16 sps:$4 sm:$0xff]   ;;  %v3142_v12 = vld [vmem:[#allocation6] ss:$16 sps:$4 sm:$0xff]  }
 0x122   :  { %1152 = vmatpush1.bf16.msra.mxu0 %v3061_v13  ;;  %1195 = vmatpush1.bf16.msra.mxu1 %v3064_v14  ;;  %v3187_v13 = vld [vmem:[#allocation6 + $0x280] ss:$16 sps:$4 sm:$0xff]   ;;  %v3189_v14 = vld [vmem:[#allocation6 + $0x284] ss:$16 sps:$4 sm:$0xff]  }
 0x123   :  { %1153 = vmatprep.subr.bf16.mxu0 %v3069_v15  ;;  %1196 = vmatprep.subr.bf16.mxu1 %v3072_v20  ;;  %v3147_v15 = vld [vmem:[#allocation6 + $0x1e4] ss:$16 sps:$4 sm:$0xff]   ;;  %v3145_v20 = vld [vmem:[#allocation6 + $0x1e0] ss:$16 sps:$4 sm:$0xff]  }
 0x126   :  { %1154 = vmatpush1.bf16.msra.mxu0 %v3067_v21  ;;  %1197 = vmatpush1.bf16.msra.mxu1 %v3070_v22  ;;  %v3193_v21 = vld [vmem:[#allocation6 + $0x260] ss:$16 sps:$4 sm:$0xff]   ;;  %v3195_v22 = vld [vmem:[#allocation6 + $0x264] ss:$16 sps:$4 sm:$0xff]  }
 0x127   :  { %1155 = vmatprep.subr.bf16.mxu0 %v3075_v23  ;;  %1198 = vmatprep.subr.bf16.mxu1 %v3078_v24  ;;  %v3150_v23 = vld [vmem:[#allocation6 + $0x1c4] ss:$16 sps:$4 sm:$0xff]   ;;  %v3148_v24 = vld [vmem:[#allocation6 + $0x1c0] ss:$16 sps:$4 sm:$0xff]  }
 0x12a   :  { %1156 = vmatpush2.bf16.msra.mxu0 %v3073_v25  ;;  %1199 = vmatpush2.bf16.msra.mxu1 %v3076_v26  ;;  %v3199_v25 = vld [vmem:[#allocation6 + $0x240] ss:$16 sps:$4 sm:$0xff]   ;;  %v3201_v26 = vld [vmem:[#allocation6 + $0x244] ss:$16 sps:$4 sm:$0xff]  }
 0x12b   :  { %1157 = vmatprep.subr.bf16.mxu0 %v3081_v27  ;;  %1200 = vmatprep.subr.bf16.mxu1 %v3084_v28  ;;  %v3153_v27 = vld [vmem:[#allocation6 + $0x1a4] ss:$16 sps:$4 sm:$0xff]   ;;  %v3151_v28 = vld [vmem:[#allocation6 + $0x1a0] ss:$16 sps:$4 sm:$0xff]  }
 0x12e   :  { %1158 = vmatpush2.bf16.msra.mxu0 %v3079_v29  ;;  %1201 = vmatpush2.bf16.msra.mxu1 %v3082_v30  ;;  %v3205_v29 = vld [vmem:[#allocation6 + $0x220] ss:$16 sps:$4 sm:$0xff]   ;;  %v3207_v30 = vld [vmem:[#allocation6 + $0x224] ss:$16 sps:$4 sm:$0xff]  }
 0x12f   :  { %1159 = vmatprep.subr.bf16.mxu0 %v3087_v31  ;;  %1202 = vmatprep.subr.bf16.mxu1 %v3090_v32  ;;  %v3156_v31 = vld [vmem:[#allocation6 + $0x184] ss:$16 sps:$4 sm:$0xff]   ;;  %v3154_v32 = vld [vmem:[#allocation6 + $0x180] ss:$16 sps:$4 sm:$0xff]  }
 0x132   :  { %1160 = vmatpush2.bf16.msra.mxu0 %v3085_v33  ;;  %1203 = vmatpush2.bf16.msra.mxu1 %v3088_v34  ;;  %v3211_v33 = vld [vmem:[#allocation6 + $0x200] ss:$16 sps:$4 sm:$0xff]   ;;  %v3213_v34 = vld [vmem:[#allocation6 + $0x204] ss:$16 sps:$4 sm:$0xff]  }
 0x133   :  { %1161 = vmatprep.subr.bf16.mxu0 %v3093_v35  ;;  %1204 = vmatprep.subr.bf16.mxu1 %v3096_v36  ;;  %v3159_v35 = vld [vmem:[#allocation6 + $0x164] ss:$16 sps:$4 sm:$0xff]   ;;  %v3157_v36 = vld [vmem:[#allocation6 + $0x160] ss:$16 sps:$4 sm:$0xff]  }
 0x136   :  { %1162 = vmatpush2.bf16.msra.mxu0 %v3091_v37  ;;  %1205 = vmatpush2.bf16.msra.mxu1 %v3094_v38  ;;  %v3217_v37 = vld [vmem:[#allocation6 + $0x3e0] ss:$16 sps:$4 sm:$0xff]   ;;  %v3219_v38 = vld [vmem:[#allocation6 + $0x3e4] ss:$16 sps:$4 sm:$0xff]  }
 0x137   :  { %1163 = vmatprep.subr.bf16.mxu0 %v3099_v39  ;;  %1206 = vmatprep.subr.bf16.mxu1 %v3102_v40  ;;  %v3162_v39 = vld [vmem:[#allocation6 + $0x144] ss:$16 sps:$4 sm:$0xff]   ;;  %v3160_v40 = vld [vmem:[#allocation6 + $0x140] ss:$16 sps:$4 sm:$0xff]  }
 0x13a   :  { %1164 = vmatpush2.bf16.msra.mxu0 %v3097_v41  ;;  %1207 = vmatpush2.bf16.msra.mxu1 %v3100_v42  ;;  %v3223_v41 = vld [vmem:[#allocation6 + $0x3c0] ss:$16 sps:$4 sm:$0xff]   ;;  %v3225_v42 = vld [vmem:[#allocation6 + $0x3c4] ss:$16 sps:$4 sm:$0xff]  }
 0x13b   :  { %1165 = vmatprep.subr.bf16.mxu0 %v3105_v43  ;;  %1208 = vmatprep.subr.bf16.mxu1 %v3108_v44  ;;  %v3165_v43 = vld [vmem:[#allocation6 + $0x124] ss:$16 sps:$4 sm:$0xff]   ;;  %v3163_v44 = vld [vmem:[#allocation6 + $0x120] ss:$16 sps:$4 sm:$0xff]  }
 0x13e   :  { %1166 = vmatpush2.bf16.msra.mxu0 %v3103_v45  ;;  %1209 = vmatpush2.bf16.msra.mxu1 %v3106_v46  ;;  %v3229_v45 = vld [vmem:[#allocation6 + $0x3a0] ss:$16 sps:$4 sm:$0xff]   ;;  %v3231_v46 = vld [vmem:[#allocation6 + $0x3a4] ss:$16 sps:$4 sm:$0xff]  }
 0x13f   :  { %1167 = vmatprep.subr.bf16.mxu0 %v3111_v47  ;;  %1210 = vmatprep.subr.bf16.mxu1 %v3114_v48  ;;  %v3168_v47 = vld [vmem:[#allocation6 + $0x104] ss:$16 sps:$4 sm:$0xff]   ;;  %v3166_v48 = vld [vmem:[#allocation6 + $0x100] ss:$16 sps:$4 sm:$0xff]  }
 0x142   :  { %1168 = vmatpush2.bf16.msra.mxu0 %v3109_v49  ;;  %1211 = vmatpush2.bf16.msra.mxu1 %v3112_v50  ;;  %v3235_v49 = vld [vmem:[#allocation6 + $0x380] ss:$16 sps:$4 sm:$0xff]   ;;  %v3237_v50 = vld [vmem:[#allocation6 + $0x384] ss:$16 sps:$4 sm:$0xff]  }
 0x143   :  { %1169 = vmatprep.subr.bf16.mxu0 %v3117_v51  ;;  %1212 = vmatprep.subr.bf16.mxu1 %v3120_v52  ;;  %v3174_v51 = vld [vmem:[#allocation6 + $0xec] ss:$16 sps:$4 sm:$0xff]   ;;  %v3241_v52 = vld [vmem:[#allocation6 + $0x360] ss:$16 sps:$4 sm:$0xff]  }
 0x146   :  { %1170 = vmatpush2.bf16.msra.mxu0 %v3115_v55  ;;  %1213 = vmatpush2.bf16.msra.mxu1 %v3118_v56  ;;  %v3243_v55 = vld [vmem:[#allocation6 + $0x364] ss:$16 sps:$4 sm:$0xff]  }
 0x147   :  { %2027 = vmatprep.subr.bf16.mxu0 %v3123_v57  ;;  %2070 = vmatprep.subr.bf16.mxu1 %v3171_v4  ;;  %v3249_v56 = vld [vmem:[#allocation6 + $0x344] ss:$16 sps:$4 sm:$0xff]   ;;  %v3247_v57 = vld [vmem:[#allocation6 + $0x340] ss:$16 sps:$4 sm:$0xff]  }
 0x149   :  { %1172 = vmatmul.mubr.bf16.vlgmr.msra.gmra.mxu0 %v3523_v53  ;;  %1215 = vmatmul.mubr.bf16.vlgmr.msra.gmra.mxu1 %v3525_v54  ;;  %v3138_v53 = vld [vmem:[#allocation6 + $0x44] ss:$16 sps:$4 sm:$0xff]   ;;  %v3136_v54 = vld [vmem:[#allocation6 + $0x40] ss:$16 sps:$4 sm:$0xff]  }
 0x14a   :  { %2028 = vmatpush1.bf16.msra.mxu0 %v3121_v58  ;;  %2071 = vmatpush1.bf16.msra.mxu1 %v3169_v3  ;;  %v3255_v58 = vld [vmem:[#allocation6 + $0x324] ss:$16 sps:$4 sm:$0xff]  }
 0x14b   :  { %2029 = vmatprep.subr.bf16.mxu0 %v3126_v59  ;;  %2072 = vmatprep.subr.bf16.mxu1 %v3177_v6  ;;  %v3253_v59 = vld [vmem:[#allocation6 + $0x320] ss:$16 sps:$4 sm:$0xff]  }
 0x14e   :  { %2030 = vmatpush1.bf16.msra.mxu0 %v3124_v60  ;;  %2073 = vmatpush1.bf16.msra.mxu1 %v3175_v5  ;;  %v3261_v60 = vld [vmem:[#allocation6 + $0x304] ss:$16 sps:$4 sm:$0xff]  }
 0x14f   :  { %2031 = vmatprep.subr.bf16.mxu0 %v3129_v61  ;;  %2074 = vmatprep.subr.bf16.mxu1 %v3183_v10  ;;  %v3259_v61 = vld [vmem:[#allocation6 + $0x300] ss:$16 sps:$4 sm:$0xff]  }
 0x152   :  { %2032 = vmatpush1.bf16.msra.mxu0 %v3127_v62  ;;  %2075 = vmatpush1.bf16.msra.mxu1 %v3181_v9  ;;  %v3267_v62 = vld [vmem:[#allocation6 + $0x2ec] ss:$16 sps:$4 sm:$0xff]  }
 0x153   :  { %2033 = vmatprep.subr.bf16.mxu0 %v3132_v63  ;;  %2076 = vmatprep.subr.bf16.mxu1 %v3189_v14  ;;  %v3534_v63 = vld [vmem:[%s3572_s4] sm:$0xf] }
 0x156   :  { %2034 = vmatpush1.bf16.msra.mxu0 %v3130_v0  ;;  %2077 = vmatpush1.bf16.msra.mxu1 %v3187_v13  ;;  %v400_v0 = vrot.slane %v3534_v63, %v3508_v16 }
 0x157   :  { %2035 = vmatprep.subr.bf16.mxu0 %v3135_v1  ;;  %2078 = vmatprep.subr.bf16.mxu1 %v3195_v22  ;;  %v396_v1 = vrot.slane %v3534_v63, %v3512_v18 }
 0x15a   :  { %2036 = vmatpush1.bf16.msra.mxu0 %v3133_v2  ;;  %2079 = vmatpush1.bf16.msra.mxu1 %v3193_v21 }
 0x15b   :  { %2037 = vmatprep.subr.bf16.mxu0 %v3138_v53  ;;  %2080 = vmatprep.subr.bf16.mxu1 %v3201_v26 }
 0x15e   :  { %2038 = vmatpush1.bf16.msra.mxu0 %v3136_v54  ;;  %2081 = vmatpush1.bf16.msra.mxu1 %v3199_v25  ;;  %v3172_v25 = vld [vmem:[#allocation6 + $0xe8] ss:$16 sps:$4 sm:$0xff]  }
 0x15f   :  { %2039 = vmatprep.subr.bf16.mxu0 %v3141_v7  ;;  %2082 = vmatprep.subr.bf16.mxu1 %v3207_v30  ;;  %v3184_v30 = vld [vmem:[#allocation6 + $0xa8] ss:$16 sps:$4 sm:$0xff]  }
 0x162   :  { %2040 = vmatpush1.bf16.msra.mxu0 %v3139_v8  ;;  %2083 = vmatpush1.bf16.msra.mxu1 %v3205_v29  ;;  %v3186_v29 = vld [vmem:[#allocation6 + $0xac] ss:$16 sps:$4 sm:$0xff]  }
 0x163   :  { %2041 = vmatprep.subr.bf16.mxu0 %v3144_v11  ;;  %2084 = vmatprep.subr.bf16.mxu1 %v3213_v34  ;;  %v3196_v34 = vld [vmem:[#allocation6 + $0x68] ss:$16 sps:$4 sm:$0xff]  }
 0x166   :  { %2042 = vmatpush1.bf16.msra.mxu0 %v3142_v12  ;;  %2085 = vmatpush1.bf16.msra.mxu1 %v3211_v33  ;;  %v3198_v33 = vld [vmem:[#allocation6 + $0x6c] ss:$16 sps:$4 sm:$0xff]  }
 0x167   :  { %2043 = vmatprep.subr.bf16.mxu0 %v3147_v15  ;;  %2086 = vmatprep.subr.bf16.mxu1 %v3219_v38  ;;  %v3208_v38 = vld [vmem:[#allocation6 + $0x28] ss:$16 sps:$4 sm:$0xff]  }
 0x16a   :  { %2044 = vmatpush2.bf16.msra.mxu0 %v3145_v20  ;;  %2087 = vmatpush2.bf16.msra.mxu1 %v3217_v37  ;;  %v3210_v37 = vld [vmem:[#allocation6 + $0x2c] ss:$16 sps:$4 sm:$0xff]  }
 0x16b   :  { %2045 = vmatprep.subr.bf16.mxu0 %v3150_v23  ;;  %2088 = vmatprep.subr.bf16.mxu1 %v3225_v42  ;;  %v3220_v42 = vld [vmem:[#allocation6 + $0x1e8] ss:$16 sps:$4 sm:$0xff]  }
 0x16e   :  { %2046 = vmatpush2.bf16.msra.mxu0 %v3148_v24  ;;  %2089 = vmatpush2.bf16.msra.mxu1 %v3223_v41  ;;  %v3222_v41 = vld [vmem:[#allocation6 + $0x1ec] ss:$16 sps:$4 sm:$0xff]  }
 0x16f   :  { %2047 = vmatprep.subr.bf16.mxu0 %v3153_v27  ;;  %2090 = vmatprep.subr.bf16.mxu1 %v3231_v46  ;;  %v3180_v27 = vld [vmem:[#allocation6 + $0xcc] ss:$16 sps:$4 sm:$0xff]   ;;  %v3232_v46 = vld [vmem:[#allocation6 + $0x1a8] ss:$16 sps:$4 sm:$0xff]  }
 0x172   :  { %2048 = vmatpush2.bf16.msra.mxu0 %v3151_v28  ;;  %2091 = vmatpush2.bf16.msra.mxu1 %v3229_v45  ;;  %v3178_v28 = vld [vmem:[#allocation6 + $0xc8] ss:$16 sps:$4 sm:$0xff]   ;;  %v3234_v45 = vld [vmem:[#allocation6 + $0x1ac] ss:$16 sps:$4 sm:$0xff]  }
 0x173   :  { %2049 = vmatprep.subr.bf16.mxu0 %v3156_v31  ;;  %2092 = vmatprep.subr.bf16.mxu1 %v3237_v50  ;;  %v3192_v31 = vld [vmem:[#allocation6 + $0x8c] ss:$16 sps:$4 sm:$0xff]   ;;  %v3244_v50 = vld [vmem:[#allocation6 + $0x168] ss:$16 sps:$4 sm:$0xff]  }
 0x176   :  { %2050 = vmatpush2.bf16.msra.mxu0 %v3154_v32  ;;  %2093 = vmatpush2.bf16.msra.mxu1 %v3235_v49  ;;  %v3190_v32 = vld [vmem:[#allocation6 + $0x88] ss:$16 sps:$4 sm:$0xff]   ;;  %v3246_v49 = vld [vmem:[#allocation6 + $0x16c] ss:$16 sps:$4 sm:$0xff]  }
 0x177   :  { %2051 = vmatprep.subr.bf16.mxu0 %v3159_v35  ;;  %2094 = vmatprep.subr.bf16.mxu1 %v3243_v55  ;;  %v3204_v35 = vld [vmem:[#allocation6 + $0x4c] ss:$16 sps:$4 sm:$0xff]   ;;  %v404_v55 = vrot.slane %v3534_v63, %v3514_v19 }
 0x17a   :  { %2052 = vmatpush2.bf16.msra.mxu0 %v3157_v36  ;;  %2095 = vmatpush2.bf16.msra.mxu1 %v3241_v52  ;;  %v3202_v36 = vld [vmem:[#allocation6 + $0x48] ss:$16 sps:$4 sm:$0xff]   ;;  %v408_v52 = vrot.slane %v3534_v63, %v3510_v17 }
 0x17b   :  { %2053 = vmatprep.subr.bf16.mxu0 %v3162_v39  ;;  %2096 = vmatprep.subr.bf16.mxu1 %v3249_v56  ;;  %v3216_v39 = vld [vmem:[#allocation6 + $0xc] ss:$16 sps:$4 sm:$0xff]  }
 0x17e   :  { %2054 = vmatpush2.bf16.msra.mxu0 %v3160_v40  ;;  %2097 = vmatpush2.bf16.msra.mxu1 %v3247_v57  ;;  %v3214_v40 = vld [vmem:[#allocation6 + $0x8] ss:$16 sps:$4 sm:$0xff]  }
 0x17f   :  { %2055 = vmatprep.subr.bf16.mxu0 %v3165_v43  ;;  %2098 = vmatprep.subr.bf16.mxu1 %v3255_v58  ;;  %v3228_v43 = vld [vmem:[#allocation6 + $0x1cc] ss:$16 sps:$4 sm:$0xff]   ;;  %v3250_v58 = vld [vmem:[#allocation6 + $0x148] ss:$16 sps:$4 sm:$0xff]  }
 0x182   :  { %2056 = vmatpush2.bf16.msra.mxu0 %v3163_v44  ;;  %2099 = vmatpush2.bf16.msra.mxu1 %v3253_v59  ;;  %v3226_v44 = vld [vmem:[#allocation6 + $0x1c8] ss:$16 sps:$4 sm:$0xff]  }
 0x183   :  { %2057 = vmatprep.subr.bf16.mxu0 %v3168_v47  ;;  %2100 = vmatprep.subr.bf16.mxu1 %v3261_v60  ;;  %v3240_v47 = vld [vmem:[#allocation6 + $0x18c] ss:$16 sps:$4 sm:$0xff]  }
 0x186   :  { %2058 = vmatpush2.bf16.msra.mxu0 %v3166_v48  ;;  %2101 = vmatpush2.bf16.msra.mxu1 %v3259_v61  ;;  %v3238_v48 = vld [vmem:[#allocation6 + $0x188] ss:$16 sps:$4 sm:$0xff]   ;;  %v3258_v61 = vld [vmem:[#allocation6 + $0x12c] ss:$16 sps:$4 sm:$0xff]  }
 0x187   :  { %2113 = vmatprep.subr.bf16.mxu0 %v3174_v51  ;;  %2156 = vmatprep.subr.bf16.mxu1 %v3267_v62  ;;  %v3252_v51 = vld [vmem:[#allocation6 + $0x14c] ss:$16 sps:$4 sm:$0xff]  }
 0x1c9   :  { %v1087_v2 = vpop.f32.mrf.mxu0  ;;  %v1130_v3 = vpop.f32.mrf.mxu1 }
 0x1ca   :  { %v1088_v5 = vadd.f32 %v1087_v2, %v396_v1 }
 0x1cb   :  { %v1089_v4 = vpop.f32.mrf.mxu0  ;;  %v1132_v53 = vpop.f32.mrf.mxu1 }
 0x1cc   :  { %v1090_v54 = vadd.f32 %v1089_v4, %v400_v0  ;;  %v1131_v13 = vadd.f32 %v1130_v3, %v1088_v5  ;;  %v3256_v4 = vld [vmem:[#allocation6 + $0x128] ss:$16 sps:$4 sm:$0xff]  }
 0x1cd   :  { %v1091_v6 = vpop.f32.mrf.mxu0  ;;  %v1134_v7 = vpop.f32.mrf.mxu1 }
 0x1ce   :  { %v1092_v8 = vadd.f32 %v1091_v6, %v396_v1  ;;  %v1133_v10 = vadd.f32 %v1132_v53, %v1090_v54  ;;  %v1225_v23 = vmax.f32 %v1131_v13, 0.0  ;;  %v3264_v54 = vld [vmem:[#allocation6 + $0x10c] ss:$16 sps:$4 sm:$0xff]  }
 0x1cf   :  { %v1093_v9 = vpop.f32.mrf.mxu0  ;;  %v1136_v14 = vpop.f32.mrf.mxu1 }
 0x1d0   :  { %v1135_v11 = vadd.f32 %v1134_v7, %v1092_v8  ;;  %v1094_v12 = vadd.f32 %v1093_v9, %v400_v0  ;;  %v1226_v21 = vmax.f32 %v1133_v10, 0.0  ;;  %v3262_v10 = vld [vmem:[#allocation6 + $0x108] ss:$16 sps:$4 sm:$0xff]  }
 0x1d2   :  { %v1137_v15 = vadd.f32 %v1136_v14, %v1094_v12  ;;  %v1229_v20 = vmax.f32 %v1135_v11, 0.0 }
 0x1d4   :  { %v1230_v22 = vmax.f32 %v1137_v15, 0.0  ;;  %v3540_v26 = vpack.c.bf16 %v1229_v20, %v1225_v23  ;;  %v3265_v20 = vld [vmem:[#allocation6 + $0x2e8] ss:$16 sps:$4 sm:$0xff]  }
 0x1d5   :  { %v3268_v23 = vld [vmem:[#allocation6 + $0x2c8] ss:$16 sps:$4 sm:$0xff]  }
 0x1d6   :  { %v1234_v24 = vpack.c.bf16 %v1230_v22, %v1226_v21  ;;  %v3270_v22 = vld [vmem:[#allocation6 + $0x2cc] ss:$16 sps:$4 sm:$0xff]  }
 0x1d8   :  { %2059 = vmatprep.mubr.bf16.mxu0 %v1234_v24 }
 0x1d9   :  { %2060 = vmatmul.mubr.bf16.vlgmr.msra.gmra.mxu0 %v3540_v26 }
 0x1da   :  { %2114 = vmatpush1.bf16.msra.mxu0 %v3172_v25  ;;  %2145 = vmatprep.mubr.bf16.mxu0 %v1234_v24  ;;  %v3273_v24 = vld [vmem:[#allocation6 + $0x2ac] ss:$16 sps:$4 sm:$0xff]   ;;  %v3271_v25 = vld [vmem:[#allocation6 + $0x2a8] ss:$16 sps:$4 sm:$0xff]  }
 0x1db   :  { %2115 = vmatprep.subr.bf16.mxu0 %v3180_v27  ;;  %v3276_v27 = vld [vmem:[#allocation6 + $0x28c] ss:$16 sps:$4 sm:$0xff]  }
 0x1de   :  { %2116 = vmatpush1.bf16.msra.mxu0 %v3178_v28  ;;  %v3313_v28 = vld [vmem:[#allocation7 + $0x78] sm:$0xff]  }
 0x1df   :  { %2117 = vmatprep.subr.bf16.mxu0 %v3186_v29  ;;  %v3314_v29 = vld [vmem:[#allocation7 + $0x38] sm:$0xff]  }
 0x1e2   :  { %2118 = vmatpush1.bf16.msra.mxu0 %v3184_v30  ;;  %v3315_v30 = vld [vmem:[#allocation7 + $0x70] sm:$0xff]  }
 0x1e3   :  { %2119 = vmatprep.subr.bf16.mxu0 %v3192_v31  ;;  %v3274_v31 = vld [vmem:[#allocation6 + $0x288] ss:$16 sps:$4 sm:$0xff]  }
 0x1e6   :  { %2120 = vmatpush1.bf16.msra.mxu0 %v3190_v32  ;;  %v3279_v32 = vld [vmem:[#allocation6 + $0x26c] ss:$16 sps:$4 sm:$0xff]  }
 0x1e7   :  { %2121 = vmatprep.subr.bf16.mxu0 %v3198_v33  ;;  %v3316_v33 = vld [vmem:[#allocation7 + $0x30] sm:$0xff]  }
 0x1ea   :  { %2122 = vmatpush1.bf16.msra.mxu0 %v3196_v34  ;;  %v3277_v34 = vld [vmem:[#allocation6 + $0x268] ss:$16 sps:$4 sm:$0xff]  }
 0x1eb   :  { %2123 = vmatprep.subr.bf16.mxu0 %v3204_v35  ;;  %v3282_v35 = vld [vmem:[#allocation6 + $0x24c] ss:$16 sps:$4 sm:$0xff]  }
 0x1ee   :  { %2124 = vmatpush1.bf16.msra.mxu0 %v3202_v36  ;;  %v3318_v36 = vld [vmem:[#allocation7 + $0x28] sm:$0xff]  }
 0x1ef   :  { %2125 = vmatprep.subr.bf16.mxu0 %v3210_v37  ;;  %v3319_v37 = vld [vmem:[#allocation7 + $0x60] sm:$0xff]  }
 0x1f2   :  { %2126 = vmatpush1.bf16.msra.mxu0 %v3208_v38  ;;  %v3280_v38 = vld [vmem:[#allocation6 + $0x248] ss:$16 sps:$4 sm:$0xff]  }
 0x1f3   :  { %2127 = vmatprep.subr.bf16.mxu0 %v3216_v39  ;;  %v3285_v39 = vld [vmem:[#allocation6 + $0x22c] ss:$16 sps:$4 sm:$0xff]  }
 0x1f6   :  { %2128 = vmatpush1.bf16.msra.mxu0 %v3214_v40  ;;  %v3320_v40 = vld [vmem:[#allocation7 + $0x20] sm:$0xff]  }
 0x1f7   :  { %2129 = vmatprep.subr.bf16.mxu0 %v3222_v41  ;;  %v3321_v41 = vld [vmem:[#allocation7 + $0x58] sm:$0xff]  }
 0x1fa   :  { %2130 = vmatpush2.bf16.msra.mxu0 %v3220_v42  ;;  %v3283_v42 = vld [vmem:[#allocation6 + $0x228] ss:$16 sps:$4 sm:$0xff]  }
 0x1fb   :  { %2131 = vmatprep.subr.bf16.mxu0 %v3228_v43  ;;  %v3288_v43 = vld [vmem:[#allocation6 + $0x20c] ss:$16 sps:$4 sm:$0xff]  }
 0x1fe   :  { %2132 = vmatpush2.bf16.msra.mxu0 %v3226_v44  ;;  %v3322_v44 = vld [vmem:[#allocation7 + $0x18] sm:$0xff]  }
 0x1ff   :  { %2133 = vmatprep.subr.bf16.mxu0 %v3234_v45  ;;  %v3286_v45 = vld [vmem:[#allocation6 + $0x208] ss:$16 sps:$4 sm:$0xff]  }
 0x202   :  { %2134 = vmatpush2.bf16.msra.mxu0 %v3232_v46  ;;  %v3291_v46 = vld [vmem:[#allocation6 + $0x3ec] ss:$16 sps:$4 sm:$0xff]  }
 0x203   :  { %2135 = vmatprep.subr.bf16.mxu0 %v3240_v47  ;;  %v3289_v47 = vld [vmem:[#allocation6 + $0x3e8] ss:$16 sps:$4 sm:$0xff]  }
 0x206   :  { %2136 = vmatpush2.bf16.msra.mxu0 %v3238_v48  ;;  %v3294_v48 = vld [vmem:[#allocation6 + $0x3cc] ss:$16 sps:$4 sm:$0xff]  }
 0x207   :  { %2137 = vmatprep.subr.bf16.mxu0 %v3246_v49  ;;  %v3292_v49 = vld [vmem:[#allocation6 + $0x3c8] ss:$16 sps:$4 sm:$0xff]  }
 0x209   :  { %v1173_v56 = vpop.f32.mrf.mxu0  ;;  %v1216_v57 = vpop.f32.mrf.mxu1 }
 0x20a   :  { %2138 = vmatpush2.bf16.msra.mxu0 %v3244_v50  ;;  %v1174_v0 = vadd.f32 %v1173_v56, %v404_v55  ;;  %v3297_v50 = vld [vmem:[#allocation6 + $0x3ac] ss:$16 sps:$4 sm:$0xff]  }
 0x20b   :  { %v1175_v59 = vpop.f32.mrf.mxu0  ;;  %v1218_v60 = vpop.f32.mrf.mxu1  ;;  %2139 = vmatprep.subr.bf16.mxu0 %v3252_v51  ;;  %v3295_v51 = vld [vmem:[#allocation6 + $0x3a8] ss:$16 sps:$4 sm:$0xff]   ;;  %v3303_v56 = vld [vmem:[#allocation6 + $0x36c] ss:$16 sps:$4 sm:$0xff]  }
 0x20c   :  { %v1176_v62 = vadd.f32 %v1175_v59, %v408_v52  ;;  %v1217_v7 = vadd.f32 %v1216_v57, %v1174_v0  ;;  %v3301_v57 = vld [vmem:[#allocation6 + $0x368] ss:$16 sps:$4 sm:$0xff]  }
 0x20d   :  { %v1177_v1 = vpop.f32.mrf.mxu0  ;;  %v1220_v2 = vpop.f32.mrf.mxu1  ;;  %v3304_v59 = vld [vmem:[#allocation6 + $0x348] ss:$16 sps:$4 sm:$0xff]  }
 0x20e   :  { %v1178_v3 = vadd.f32 %v1177_v1, %v404_v55  ;;  %2140 = vmatpush2.bf16.msra.mxu0 %v3250_v58  ;;  %v1219_v5 = vadd.f32 %v1218_v60, %v1176_v62  ;;  %v1227_v14 = vmax.f32 %v1217_v7, 0.0  ;;  %v3298_v55 = vld [vmem:[#allocation6 + $0x388] ss:$16 sps:$4 sm:$0xff]   ;;  %v3306_v58 = vld [vmem:[#allocation6 + $0x34c] ss:$16 sps:$4 sm:$0xff]   ;;  %v3323_v1 = vld [vmem:[#allocation7 + $0x50] sm:$0xff]  }
 0x20f   :  { %v1179_v53 = vpop.f32.mrf.mxu0  ;;  %2141 = vmatprep.subr.bf16.mxu0 %v3258_v61  ;;  %v1222_v8 = vpop.f32.mrf.mxu1  ;;  %v3309_v60 = vld [vmem:[#allocation6 + $0x32c] ss:$16 sps:$4 sm:$0xff]   ;;  %v3307_v61 = vld [vmem:[#allocation6 + $0x328] ss:$16 sps:$4 sm:$0xff]   ;;  %v3332_v7 = vld [vmem:[#allocation7 + $0xb0] sm:$0xff]  }
 0x210   :  { %v1221_v63 = vadd.f32 %v1220_v2, %v1178_v3  ;;  %v1180_v6 = vadd.f32 %v1179_v53, %v408_v52  ;;  %v1228_v12 = vmax.f32 %v1219_v5, 0.0  ;;  %v3300_v52 = vld [vmem:[#allocation6 + $0x38c] ss:$16 sps:$4 sm:$0xff]   ;;  %v3310_v0 = vld [vmem:[#allocation6 + $0x308] ss:$16 sps:$4 sm:$0xff]   ;;  %v3324_v2 = vld [vmem:[#allocation7 + $0x10] sm:$0xff]  }
 0x211   :  { %v3312_v62 = vld [vmem:[#allocation6 + $0x30c] ss:$16 sps:$4 sm:$0xff]   ;;  %v3327_v53 = vld [vmem:[#allocation7 + $0x40] sm:$0xff]  }
 0x212   :  { %v1223_v9 = vadd.f32 %v1222_v8, %v1180_v6  ;;  %2142 = vmatpush2.bf16.msra.mxu0 %v3256_v4  ;;  %v1231_v11 = vmax.f32 %v1221_v63, 0.0  ;;  %v3325_v3 = vld [vmem:[#allocation7 + $0x48] sm:$0xff]   ;;  %v3329_v5 = vld [vmem:[#allocation7 + $0xf8] sm:$0xff]   ;;  %v3331_v6 = vld [vmem:[#allocation7 + $0xf0] sm:$0xff]  }
 0x213   :  { %2143 = vmatprep.subr.bf16.mxu0 %v3264_v54  ;;  %v3326_v4 = vld [vmem:[#allocation7 + $0x8] sm:$0xff]   ;;  %v3328_v54 = vld [vmem:[#allocation7] sm:$0xff]   ;;  %v3330_v63 = vld [vmem:[#allocation7 + $0xb8] sm:$0xff]  }
 0x214   :  { %v1232_v13 = vmax.f32 %v1223_v9, 0.0  ;;  %v3547_v21 = vpack.c.bf16 %v1231_v11, %v1227_v14  ;;  %v3333_v8 = vld [vmem:[#allocation7 + $0xe8] sm:$0xff]   ;;  %v3336_v11 = vld [vmem:[#allocation7 + $0xa0] sm:$0xff]   ;;  %v3339_v14 = vld [vmem:[#allocation7 + $0xd0] sm:$0xff]  }
 0x215   :  { %v3334_v9 = vld [vmem:[#allocation7 + $0xa8] sm:$0xff]  }
 0x216   :  { %v1236_v15 = vpack.c.bf16 %v1232_v13, %v1228_v12  ;;  %2144 = vmatpush2.bf16.msra.mxu0 %v3262_v10  ;;  %v3335_v10 = vld [vmem:[#allocation7 + $0xe0] sm:$0xff]   ;;  %v3337_v12 = vld [vmem:[#allocation7 + $0xd8] sm:$0xff]  }
 0x217   :  { %2864 = vmatprep.subr.bf16.mxu0 %v3313_v28  ;;  %v3338_v13 = vld [vmem:[#allocation7 + $0x98] sm:$0xff]  }
 0x218   :  { %2102 = vmatprep.mubr.bf16.mxu1 %v1236_v15 }
 0x219   :  { %2103 = vmatmul.mubr.bf16.vlgmr.msra.gmra.mxu1 %v3547_v21  ;;  %2146 = vmatmul.mubr.bf16.vlgmr.msra.gmra.mxu0 %v3540_v26  ;;  %v3317_v26 = vld [vmem:[#allocation7 + $0x68] sm:$0xff]  }
 0x21a   :  { %2157 = vmatpush1.bf16.msra.mxu1 %v3265_v20  ;;  %2188 = vmatprep.mubr.bf16.mxu1 %v1236_v15  ;;  %v3340_v15 = vld [vmem:[#allocation7 + $0x90] sm:$0xff]   ;;  %v3341_v20 = vld [vmem:[#allocation7 + $0xc8] sm:$0xff]  }
 0x21b   :  { %2158 = vmatprep.subr.bf16.mxu1 %v3270_v22  ;;  %2865 = vmatpush3.bf16.msra.mxu0 %v3314_v29  ;;  %v3343_v22 = vld [vmem:[#allocation7 + $0xc0] sm:$0xff]  }
 0x21c   :  { %2866 = vmatprep.subr.bf16.mxu0 %v3315_v30 }
 0x21e   :  { %2159 = vmatpush1.bf16.msra.mxu1 %v3268_v23  ;;  %v3344_v23 = vld [vmem:[#allocation7 + $0x80] sm:$0xff]  }
 0x21f   :  { %2160 = vmatprep.subr.bf16.mxu1 %v3273_v24  ;;  %2867 = vmatpush3.bf16.msra.mxu0 %v3316_v33 }
 0x220   :  { %2868 = vmatprep.subr.bf16.mxu0 %v3317_v26 }
 0x222   :  { %2161 = vmatpush1.bf16.msra.mxu1 %v3271_v25 }
 0x223   :  { %2162 = vmatprep.subr.bf16.mxu1 %v3276_v27  ;;  %2869 = vmatpush3.bf16.msra.mxu0 %v3318_v36  ;;  %v1365_v27 = vld [vmem:[%s3574_s6] sm:$0xf] }
 0x224   :  { %2870 = vmatprep.subr.bf16.mxu0 %v3319_v37  ;;  %v1374_v29 = vrot.slane %v1365_v27, %v3508_v16  ;;  %v1370_v30 = vrot.slane %v1365_v27, %v3512_v18 }
 0x226   :  { %2163 = vmatpush1.bf16.msra.mxu1 %v3274_v31 }
 0x227   :  { %2164 = vmatprep.subr.bf16.mxu1 %v3279_v32  ;;  %2871 = vmatpush3.bf16.msra.mxu0 %v3320_v40 }
 0x228   :  { %2872 = vmatprep.subr.bf16.mxu0 %v3321_v41 }
 0x22a   :  { %2165 = vmatpush1.bf16.msra.mxu1 %v3277_v34 }
 0x22b   :  { %2166 = vmatprep.subr.bf16.mxu1 %v3282_v35  ;;  %2873 = vmatpush3.bf16.msra.mxu0 %v3322_v44 }
 0x22c   :  { %2874 = vmatprep.subr.bf16.mxu0 %v3323_v1 }
 0x22e   :  { %2167 = vmatpush1.bf16.msra.mxu1 %v3280_v38 }
 0x22f   :  { %2168 = vmatprep.subr.bf16.mxu1 %v3285_v39  ;;  %2875 = vmatpush3.bf16.msra.mxu0 %v3324_v2 }
 0x230   :  { %2876 = vmatprep.subr.bf16.mxu0 %v3325_v3 }
 0x232   :  { %2169 = vmatpush1.bf16.msra.mxu1 %v3283_v42 }
 0x233   :  { %2170 = vmatprep.subr.bf16.mxu1 %v3288_v43  ;;  %2877 = vmatpush3.bf16.msra.mxu0 %v3326_v4 }
 0x234   :  { %2878 = vmatprep.subr.bf16.mxu0 %v3327_v53 }
 0x236   :  { %2171 = vmatpush1.bf16.msra.mxu1 %v3286_v45 }
 0x237   :  { %2172 = vmatprep.subr.bf16.mxu1 %v3291_v46  ;;  %2879 = vmatpush3.bf16.msra.mxu0 %v3328_v54 }
 0x23a   :  { %2173 = vmatpush2.bf16.msra.mxu1 %v3289_v47 }
 0x23b   :  { %2174 = vmatprep.subr.bf16.mxu1 %v3294_v48 }
 0x23e   :  { %2175 = vmatpush2.bf16.msra.mxu1 %v3292_v49 }
 0x23f   :  { %2176 = vmatprep.subr.bf16.mxu1 %v3297_v50  ;;  %v1382_v50 = vrot.slane %v1365_v27, %v3510_v17 }
 0x242   :  { %2177 = vmatpush2.bf16.msra.mxu1 %v3295_v51  ;;  %v1378_v51 = vrot.slane %v1365_v27, %v3514_v19 }
 0x243   :  { %2178 = vmatprep.subr.bf16.mxu1 %v3300_v52 }
 0x246   :  { %2179 = vmatpush2.bf16.msra.mxu1 %v3298_v55 }
 0x247   :  { %2180 = vmatprep.subr.bf16.mxu1 %v3303_v56 }
 0x24a   :  { %2181 = vmatpush2.bf16.msra.mxu1 %v3301_v57 }
 0x24b   :  { %2182 = vmatprep.subr.bf16.mxu1 %v3306_v58 }
 0x24e   :  { %2183 = vmatpush2.bf16.msra.mxu1 %v3304_v59 }
 0x24f   :  { %2184 = vmatprep.subr.bf16.mxu1 %v3309_v60 }
 0x252   :  { %2185 = vmatpush2.bf16.msra.mxu1 %v3307_v61 }
 0x253   :  { %2186 = vmatprep.subr.bf16.mxu1 %v3312_v62 }
 0x256   :  { %2187 = vmatpush2.bf16.msra.mxu1 %v3310_v0 }
 0x257   :  { %2886 = vmatprep.subr.bf16.mxu1 %v3329_v5 }
 0x259   :  { %2189 = vmatmul.mubr.bf16.vlgmr.msra.gmra.mxu1 %v3547_v21  ;;  %v3342_v21 = vld [vmem:[#allocation7 + $0x88] sm:$0xff]  }
 0x25a   :  { %2887 = vmatpush3.bf16.msra.mxu1 %v3330_v63 }
 0x25b   :  { %2888 = vmatprep.subr.bf16.mxu1 %v3331_v6 }
 0x25e   :  { %2889 = vmatpush3.bf16.msra.mxu1 %v3332_v7 }
 0x25f   :  { %2890 = vmatprep.subr.bf16.mxu1 %v3333_v8 }
 0x262   :  { %2891 = vmatpush3.bf16.msra.mxu1 %v3334_v9  ;;  %v2831_v9 = vld [vmem:[%s3576_s8] ss:$0 sm:$0xff] }
 0x263   :  { %2892 = vmatprep.subr.bf16.mxu1 %v3335_v10 }
 0x266   :  { %2893 = vmatpush3.bf16.msra.mxu1 %v3336_v11 }
 0x267   :  { %2894 = vmatprep.subr.bf16.mxu1 %v3337_v12 }
 0x26a   :  { %2895 = vmatpush3.bf16.msra.mxu1 %v3338_v13 }
 0x26b   :  { %2896 = vmatprep.subr.bf16.mxu1 %v3339_v14 }
 0x26e   :  { %2897 = vmatpush3.bf16.msra.mxu1 %v3340_v15 }
 0x26f   :  { %2898 = vmatprep.subr.bf16.mxu1 %v3341_v20 }
 0x272   :  { %2899 = vmatpush3.bf16.msra.mxu1 %v3342_v21 }
 0x273   :  { %2900 = vmatprep.subr.bf16.mxu1 %v3343_v22 }
 0x276   :  { %2901 = vmatpush3.bf16.msra.mxu1 %v3344_v23 }
 0x299   :  { %v2061_v24 = vpop.f32.mrf.mxu0 }
 0x29a   :  { %v2062_v35 = vadd.f32 %v2061_v24, %v1370_v30 }
 0x29b   :  { %v2063_v25 = vpop.f32.mrf.mxu0 }
 0x29c   :  { %v2064_v26 = vadd.f32 %v2063_v25, %v1374_v29 }
 0x29d   :  { %v2065_v28 = vpop.f32.mrf.mxu0 }
 0x29e   :  { %v2066_v34 = vadd.f32 %v2065_v28, %v1370_v30 }
 0x29f   :  { %v2067_v32 = vpop.f32.mrf.mxu0 }
 0x2a0   :  { %v2068_v37 = vadd.f32 %v2067_v32, %v1374_v29 }
 0x2d9   :  { %v2104_v31 = vpop.f32.mrf.mxu1  ;;  %v2147_v18 = vpop.f32.mrf.mxu0 }
 0x2da   :  { %v2105_v40 = vadd.f32 %v2104_v31, %v2062_v35  ;;  %v2148_v59 = vadd.f32 %v2147_v18, %v1378_v51 }
 0x2db   :  { %v2106_v33 = vpop.f32.mrf.mxu1  ;;  %v2149_v48 = vpop.f32.mrf.mxu0 }
 0x2dc   :  { %v2107_v38 = vadd.f32 %v2106_v33, %v2064_v26  ;;  %v2199_v46 = vmax.f32 %v2105_v40, 0.0  ;;  %v2150_v57 = vadd.f32 %v2149_v48, %v1382_v50 }
 0x2dd   :  { %v2108_v36 = vpop.f32.mrf.mxu1  ;;  %v2151_v49 = vpop.f32.mrf.mxu0 }
 0x2de   :  { %v2109_v39 = vadd.f32 %v2108_v36, %v2066_v34  ;;  %v2200_v44 = vmax.f32 %v2107_v38, 0.0  ;;  %v2152_v58 = vadd.f32 %v2151_v49, %v1378_v51 }
 0x2df   :  { %v2110_v41 = vpop.f32.mrf.mxu1  ;;  %v2153_v55 = vpop.f32.mrf.mxu0 }
 0x2e0   :  { %v2111_v42 = vadd.f32 %v2110_v41, %v2068_v37  ;;  %v2203_v43 = vmax.f32 %v2109_v39, 0.0  ;;  %v2154_v61 = vadd.f32 %v2153_v55, %v1382_v50 }
 0x2e2   :  { %v2204_v45 = vmax.f32 %v2111_v42, 0.0  ;;  %v2207_v47 = vpack.c.bf16 %v2203_v43, %v2199_v46 }
 0x2e4   :  { %v2208_v16 = vpack.c.bf16 %v2204_v45, %v2200_v44 }
 0x2e6   :  { %2506 = vmatprep.mubr.bf16.mxu0 %v2208_v16 }
 0x2e7   :  { %2507 = vmatmul.mubr.bf16.vlgmr.msra.gmra.mxu0 %v2207_v47 }
 0x319   :  { %v2190_v52 = vpop.f32.mrf.mxu1 }
 0x31a   :  { %v2191_v1 = vadd.f32 %v2190_v52, %v2148_v59 }
 0x31b   :  { %v2192_v56 = vpop.f32.mrf.mxu1 }
 0x31c   :  { %v2193_v62 = vadd.f32 %v2192_v56, %v2150_v57  ;;  %v2201_v5 = vmax.f32 %v2191_v1, 0.0 }
 0x31d   :  { %v2194_v60 = vpop.f32.mrf.mxu1 }
 0x31e   :  { %v2195_v0 = vadd.f32 %v2194_v60, %v2152_v58  ;;  %v2202_v53 = vmax.f32 %v2193_v62, 0.0 }
 0x31f   :  { %v2196_v2 = vpop.f32.mrf.mxu1 }
 0x320   :  { %v2197_v3 = vadd.f32 %v2196_v2, %v2154_v61  ;;  %v2205_v4 = vmax.f32 %v2195_v0, 0.0 }
 0x322   :  { %v2206_v54 = vmax.f32 %v2197_v3, 0.0  ;;  %v2209_v63 = vpack.c.bf16 %v2205_v4, %v2201_v5 }
 0x324   :  { %v2210_v17 = vpack.c.bf16 %v2206_v54, %v2202_v53 }
 0x326   :  { %2547 = vmatprep.mubr.bf16.mxu1 %v2210_v17 }
 0x327   :  { %2548 = vmatmul.mubr.bf16.vlgmr.msra.gmra.mxu1 %v2209_v63 }
 0x3a7   :  { %v2880_v19 = vpop.f32.mrf.mxu0 }
 0x3a9   :  { %v2881_v6 = vpop.f32.mrf.mxu0 }
 0x3aa   :  { %v2882_v8 = vadd.f32 %v2881_v6, %v2880_v19 }
 0x3ab   :  { %v2883_v7 = vpop.f32.mrf.mxu0 }
 0x3ac   :  { %v2509_v13 = vadd.f32 %v2882_v8, %v2831_v9 }
 0x3ad   :  { %v2884_v10 = vpop.f32.mrf.mxu0 }
 0x3ae   :  { %v2885_v14 = vadd.f32 %v2884_v10, %v2883_v7 }
 0x3b0   :  { %v2512_v23 = vadd.f32 %v2885_v14, %v2831_v9 }
 0x3e7   :  { %v2902_v11 = vpop.f32.mrf.mxu1 }
 0x3e9   :  { %v2903_v12 = vpop.f32.mrf.mxu1 }
 0x3ea   :  { %v2904_v15 = vadd.f32 %v2903_v12, %v2902_v11 }
 0x3eb   :  { %v2905_v20 = vpop.f32.mrf.mxu1 }
 0x3ec   :  { %v2550_v21 = vadd.f32 %v2904_v15, %v2509_v13 }
 0x3ed   :  { %v2906_v22 = vpop.f32.mrf.mxu1 }
 0x3ee   :  { %2556 = vst [vmem:[%s3577_s9] sm:$0xff] %v2550_v21  ;;  %v2907_v24 = vadd.f32 %v2906_v22, %v2905_v20 }
 0x3f0   :  { %v2553_v25 = vadd.f32 %v2907_v24, %v2512_v23 }
 0x3f2   :  { %2557 = vst [vmem:[%s3577_s9 + $0x8] sm:$0xff] %v2553_v25 }
 0x3f3   :  { %2562 = vsyncpa [#allocation3], 1 }
 0x3f4   :  { %2563 = vsyncpa [#allocation5], 1 }
 0x3f5   :  { %2564 = vsyncpa [#allocation8], 1 }

</bundles_post_ra>
